<compile_context>
chip_gen: v7x
topology: tpu7x:2x2x1
jax: 0.10.0
libtpu: 0.0.40
codegen_flags: <defaults>
</compile_context>

<pallas_src>
import functools
import math

import jax
import jax.numpy as jnp
from jax import lax
from jax.experimental import pallas as pl
from jax.experimental.pallas import tpu as pltpu

DIM_HEAD = 64
SCALE = DIM_HEAD ** (-0.5)
BN_EPS = 1e-5

# Aligned placement of the zero-padded tile inside the VMEM scratch buffers:
# row offset 8 (sublane-tile aligned), column offset 128 (lane-tile aligned), so the
# scratch *stores* are tile-aligned and only the cheap shifted *reads* are offset.
_R0 = 8
_C0 = 128


# ----------------------------------------------------------------------------
# Kernel A: channel-blocked
#   out = softmax(v v^T * scale) v + relu(dwconv3x3(v) + bias)   (BN folded)
# ----------------------------------------------------------------------------
def _attn_dw_kernel(v_ref, w_ref, b_ref, o_ref, sp_ref, *, H, W, scale):
    v = v_ref[0]                                   # (CBLK, H, W)
    cb = v.shape[0]

    # --- spatial self-attention, batched over the channel block (MXU) ---
    s = lax.dot_general(v, v, (((2,), (2,)), ((0,), (0,))),
                        preferred_element_type=jnp.float32) * scale      # (CBLK, H, H)
    s = s - jnp.max(s, axis=-1, keepdims=True)
    e = jnp.exp(s)
    p = e * pl.reciprocal(jnp.sum(e, axis=-1, keepdims=True), approx=False)
    attn = lax.dot_general(p, v, (((2,), (1,)), ((0,), (0,))),
                           preferred_element_type=jnp.float32)           # (CBLK, H, W)

    # --- depthwise 3x3 conv (padding=1), vectorized over CBLK, padded in-kernel ---
    sp_ref[...] = jnp.zeros_like(sp_ref)
    sp_ref[:, _R0:_R0 + H, _C0:_C0 + W] = v        # aligned store of the tile
    sp = sp_ref[...]
    w = w_ref[...]                                 # (CBLK, 3, 3)
    acc = jnp.zeros((cb, H, W), jnp.float32)
    for dh in range(3):
        for dw in range(3):
            r0 = _R0 + dh - 1
            c0 = _C0 + dw - 1
            acc = acc + w[:, dh:dh + 1, dw:dw + 1] * sp[:, r0:r0 + H, c0:c0 + W]
    conv = jnp.maximum(acc + b_ref[...], 0.0)

    o_ref[0] = attn + conv


def attn_plus_dwconv(v, dw_w_eff, dw_b_eff, cblk=None):
    B, C, H, W = v.shape
    if cblk is None:
        cblk = next(d for d in (16, 8, 4, 2, 1) if d <= C and C % d == 0)
    assert C % cblk == 0
    kernel = functools.partial(_attn_dw_kernel, H=H, W=W, scale=SCALE)
    cost = pl.CostEstimate(
        flops=int(B * C * (4 * H * H * W + 3 * H * H + 21 * H * W)),
        transcendentals=int(B * C * H * H),
        bytes_accessed=int(4 * (2 * B * C * H * W + 10 * C)),
    )
    return pl.pallas_call(
        kernel,
        out_shape=jax.ShapeDtypeStruct((B, C, H, W), jnp.float32),
        grid=(B, C // cblk),
        in_specs=[
            pl.BlockSpec((1, cblk, H, W), lambda b, c: (b, c, 0, 0)),
            pl.BlockSpec((cblk, 3, 3), lambda b, c: (c, 0, 0)),    # VMEM weights
            pl.BlockSpec((cblk, 1, 1), lambda b, c: (c, 0, 0)),    # VMEM bias
        ],
        out_specs=pl.BlockSpec((1, cblk, H, W), lambda b, c: (b, c, 0, 0)),
        scratch_shapes=[pltpu.VMEM((cblk, _R0 + H + 2, _C0 + W + 2), jnp.float32)],
        compiler_params=pltpu.CompilerParams(
            dimension_semantics=("parallel", "parallel")),
        cost_estimate=cost,
    )(v, dw_w_eff, dw_b_eff.reshape(C, 1, 1))


# ----------------------------------------------------------------------------
# Kernel B: fused ghost module (1x1 conv + BN + ReLU, cheap depthwise 3x3 + BN +
#           ReLU, channel concat) in one pallas_call per batch element.
# ----------------------------------------------------------------------------
def _ghost_kernel(x_ref, wm_ref, bm_ref, wc_ref, bc_ref, ml_ref, mr_ref,
                  o_ref, mp_ref, *, H, W, Cm):
    HW = H * W
    x = x_ref[0]                                                    # (C, HW)

    # main branch: 1x1 conv (+ folded BN) + ReLU as one lane-dense MXU matmul
    main = jnp.dot(wm_ref[...], x, preferred_element_type=jnp.float32) + bm_ref[...]
    main = jnp.maximum(main, 0.0)                                   # (Cm, HW)
    o_ref[0, 0] = main

    # cheap branch: depthwise 3x3 conv on the VMEM-resident `main`, computed in the
    # flattened row-major layout: rows zero-padded via an aligned VMEM scratch,
    # column wrap-around removed with the precomputed masks.
    mp_ref[...] = jnp.zeros_like(mp_ref)
    mp_ref[:, _C0:_C0 + HW] = main                                  # aligned store
    mp = mp_ref[...]
    wc = wc_ref[...]                                                # (Cc, 9)
    ml = ml_ref[...]                                                # (1, HW) col >= 1
    mr = mr_ref[...]                                                # (1, HW) col <= W-2
    acc = jnp.zeros_like(main)
    for dh in range(3):
        for dw in range(3):
            s = (dh - 1) * W + (dw - 1)
            tap = mp[:, _C0 + s:_C0 + s + HW]
            if dw == 0:
                tap = tap * ml
            elif dw == 2:
                tap = tap * mr
            k = dh * 3 + dw
            acc = acc + wc[:, k:k + 1] * tap
    o_ref[0, 1] = jnp.maximum(acc + bc_ref[...], 0.0)


def ghost_module(x, main_w, main_b, cheap_w, cheap_b):
    B, C, H, W = x.shape
    HW = H * W
    Cm = main_w.shape[0]
    Cc = cheap_w.shape[0]
    assert Cc == Cm, "even oup so the cheap branch is a plain depthwise conv"
    assert _C0 >= W + 1, "row padding in the flattened layout must fit the scratch"

    x2 = x.reshape(B, C, HW)                       # free contiguous reshape
    col = jnp.arange(HW, dtype=jnp.int32) % W
    mask_l = (col >= 1).astype(jnp.float32).reshape(1, HW)
    mask_r = (col <= W - 2).astype(jnp.float32).reshape(1, HW)

    kernel = functools.partial(_ghost_kernel, H=H, W=W, Cm=Cm)
    cost = pl.CostEstimate(
        flops=int(B * (2 * Cm * C * HW + 2 * Cm * HW + 21 * Cc * HW)),
        transcendentals=0,
        bytes_accessed=int(4 * (B * C * HW + 2 * B * Cm * HW + Cm * C
                                + 10 * Cc + 2 * Cm + 2 * HW)),
    )
    y = pl.pallas_call(
        kernel,
        out_shape=jax.ShapeDtypeStruct((B, 2, Cm, HW), jnp.float32),
        grid=(B,),
        in_specs=[
            pl.BlockSpec((1, C, HW), lambda b: (b, 0, 0)),
            pl.BlockSpec((Cm, C), lambda b: (0, 0)),
            pl.BlockSpec((Cm, 1), lambda b: (0, 0)),
            pl.BlockSpec((Cc, 9), lambda b: (0, 0)),
            pl.BlockSpec((Cc, 1), lambda b: (0, 0)),
            pl.BlockSpec((1, HW), lambda b: (0, 0)),
            pl.BlockSpec((1, HW), lambda b: (0, 0)),
        ],
        out_specs=pl.BlockSpec((1, 2, Cm, HW), lambda b: (b, 0, 0, 0)),
        scratch_shapes=[pltpu.VMEM((Cm, 2 * _C0 + HW), jnp.float32)],
        compiler_params=pltpu.CompilerParams(dimension_semantics=("parallel",)),
        cost_estimate=cost,
    )(x2, main_w, main_b.reshape(Cm, 1), cheap_w.reshape(Cc, 9),
      cheap_b.reshape(Cc, 1), mask_l, mask_r)
    # (B, 2, Cm, HW) -> (B, 2*Cm, H, W): main channels first, cheap channels second,
    # exactly torch.cat((main, cheap), dim=1).
    return y.reshape(B, 2 * Cm, H, W)


# ----------------------------------------------------------------------------
# MoSA forward
# ----------------------------------------------------------------------------
def mosa_forward(v, params, cblk=None):
    out = attn_plus_dwconv(v, params["dw_w_eff"], params["dw_b_eff"], cblk)
    return ghost_module(out, params["main_w_eff"], params["main_b_eff"],
                        params["cheap_w_eff"], params["cheap_b_eff"])


# ----------------------------------------------------------------------------
# Deterministic parameter construction (BatchNorm folded, inference semantics)
# ----------------------------------------------------------------------------
def _fold_bn(gamma, beta, mean, var):
    s = gamma / jnp.sqrt(var + BN_EPS)
    return s, beta - mean * s


def make_params(key, inp, oup):
    main_out = math.ceil(0.5 * oup)
    cheap_out = oup - main_out
    assert cheap_out == main_out, "pick even oup so the cheap depthwise conv is valid"
    ks = jax.random.split(key, 15)

    def bn(c, k0, k1, k2, k3):
        gamma = 0.5 + jax.random.uniform(k0, (c,), jnp.float32)
        beta = 0.1 * jax.random.normal(k1, (c,), jnp.float32)
        mean = 0.1 * jax.random.normal(k2, (c,), jnp.float32)
        var = 0.5 + jax.random.uniform(k3, (c,), jnp.float32)
        return _fold_bn(gamma, beta, mean, var)

    # dw_conv = dwconv3x3_block(inp, inp)
    dw_w = 0.3 * jax.random.normal(ks[0], (inp, 3, 3), jnp.float32)
    dw_s, dw_b = bn(inp, ks[1], ks[2], ks[3], ks[4])
    # ghost main: conv1x1_block(inp, main_out)
    m_w = 0.3 * jax.random.normal(ks[5], (main_out, inp), jnp.float32)
    m_s, m_b = bn(main_out, ks[6], ks[7], ks[8], ks[9])
    # ghost cheap: dwconv3x3_block(main_out, cheap_out)
    c_w = 0.3 * jax.random.normal(ks[10], (cheap_out, 3, 3), jnp.float32)
    c_s, c_b = bn(cheap_out, ks[11], ks[12], ks[13], ks[14])

    return {
        "dw_w_eff": dw_w * dw_s[:, None, None], "dw_b_eff": dw_b,
        "main_w_eff": m_w * m_s[:, None], "main_b_eff": m_b,
        "cheap_w_eff": c_w * c_s[:, None, None], "cheap_b_eff": c_b,
    }


# ----------------------------------------------------------------------------
# Pure-JAX reference (for correctness check)
# ----------------------------------------------------------------------------
def ref_mosa(v, params):
    s = jnp.einsum("bchw,bcgw->bchg", v, v) * SCALE
    p = jax.nn.softmax(s, axis=-1)
    attn = jnp.einsum("bchg,bcgw->bchw", p, v)

    def dw(x, w, b):
        c = x.shape[1]
        y = lax.conv_general_dilated(
            x, w.reshape(c, 1, 3, 3), (1, 1), ((1, 1), (1, 1)),
            dimension_numbers=("NCHW", "OIHW", "NCHW"), feature_group_count=c)
        return jnp.maximum(y + b.reshape(1, c, 1, 1), 0.0)

    out = attn + dw(v, params["dw_w_eff"], params["dw_b_eff"])
    main = jnp.einsum("oc,bchw->bohw", params["main_w_eff"], out)
    main = jnp.maximum(main + params["main_b_eff"].reshape(1, -1, 1, 1), 0.0)
    cheap = dw(main, params["cheap_w_eff"], params["cheap_b_eff"])
    return jnp.concatenate([main, cheap], axis=1)


if __name__ == "__main__":
    B, INP, OUP, H, W = 2, 4, 8, 16, 16
    key = jax.random.PRNGKey(0)
    kv, kp = jax.random.split(key)
    v = jax.random.normal(kv, (B, INP, H, W), jnp.float32)
    params = make_params(kp, INP, OUP)

    out = jax.block_until_ready(mosa_forward(v, params))
    ref = jax.block_until_ready(ref_mosa(v, params))

    assert out.shape == (B, OUP, H, W), out.shape
    err = float(jnp.max(jnp.abs(out - ref)))
    assert jnp.allclose(out, ref, atol=2e-4, rtol=2e-4), err
    print("KERNEL_OK")
</pallas_src>

<mosaic_0001>
module attributes {stable_mosaic.version = 11 : i64} {
  func.func @_attn_dw_kernel(%arg0: i32, %arg1: i32, %arg2: memref<1x4x16x16xf32, #tpu.memory_space<vmem>>, %arg3: memref<4x3x3xf32, #tpu.memory_space<vmem>>, %arg4: memref<4x1x1xf32, #tpu.memory_space<vmem>>, %arg5: memref<1x4x16x16xf32, #tpu.memory_space<vmem>>, %arg6: memref<4x26x146xf32, #tpu.memory_space<vmem>>) attributes {dimension_semantics = [#tpu.dimension_semantics<parallel>, #tpu.dimension_semantics<parallel>], iteration_bounds = array<i64: 2, 1>, scalar_prefetch = 0 : i64, scratch_operands = 1 : i64, tpu.core_type = #tpu.core_type<tc>, window_params = [{transform_indices = @transform_0, window_bounds = array<i64: 1, 4, 16, 16>}, {transform_indices = @transform_1, window_bounds = array<i64: 4, 3, 3>}, {transform_indices = @transform_2, window_bounds = array<i64: 4, 1, 1>}, {transform_indices = @transform_3, window_bounds = array<i64: 1, 4, 16, 16>}]} {
    %c0 = arith.constant 0 : index
    %c0_0 = arith.constant 0 : index
    %c0_1 = arith.constant 0 : index
    %c0_2 = arith.constant 0 : index
    %0 = vector.load %arg2[%c0, %c0_0, %c0_1, %c0_2] : memref<1x4x16x16xf32, #tpu.memory_space<vmem>>, vector<1x4x16x16xf32>
    %1 = vector.shape_cast %0 : vector<1x4x16x16xf32> to vector<4x16x16xf32>
    %cst = arith.constant dense<0.000000e+00> : vector<4x16x16xf32>
    %2 = tpu.matmul %1, %1, %cst {dimension_numbers = #tpu.dot_dimension_numbers<[2], [2], [1], [1], [0, 0, 0, 1, 1, 1], [0], [0]>} : vector<4x16x16xf32>, vector<4x16x16xf32>, vector<4x16x16xf32> -> vector<4x16x16xf32>
    %cst_3 = arith.constant 1.250000e-01 : f32
    %3 = vector.broadcast %cst_3 : f32 to vector<4x16x16xf32>
    %4 = arith.mulf %2, %3 : vector<4x16x16xf32>
    %cst_4 = arith.constant dense<0xFF800000> : vector<4x16xf32>
    %5 = vector.multi_reduction <maximumf>, %4, %cst_4 [2] : vector<4x16x16xf32> to vector<4x16xf32>
    %6 = vector.shape_cast %5 : vector<4x16xf32> to vector<4x16x1xf32>
    %7 = vector.broadcast %6 : vector<4x16x1xf32> to vector<4x16x16xf32>
    %8 = arith.subf %4, %7 : vector<4x16x16xf32>
    %9 = math.exp %8 : vector<4x16x16xf32>
    %cst_5 = arith.constant dense<0.000000e+00> : vector<4x16xf32>
    %10 = vector.multi_reduction <add>, %9, %cst_5 [2] : vector<4x16x16xf32> to vector<4x16xf32>
    %11 = vector.shape_cast %10 : vector<4x16xf32> to vector<4x16x1xf32>
    %12 = tpu.reciprocal %11 : vector<4x16x1xf32> -> vector<4x16x1xf32>
    %13 = vector.broadcast %12 : vector<4x16x1xf32> to vector<4x16x16xf32>
    %14 = arith.mulf %9, %13 : vector<4x16x16xf32>
    %cst_6 = arith.constant dense<0.000000e+00> : vector<4x16x16xf32>
    %15 = tpu.matmul %14, %1, %cst_6 {dimension_numbers = #tpu.dot_dimension_numbers<[2], [1], [1], [2], [0, 0, 0, 1, 1, 2], [0], [0]>} : vector<4x16x16xf32>, vector<4x16x16xf32>, vector<4x16x16xf32> -> vector<4x16x16xf32>
    %cst_7 = arith.constant 0.000000e+00 : f32
    %16 = vector.broadcast %cst_7 : f32 to vector<4x26x146xf32>
    %c0_8 = arith.constant 0 : index
    %c0_9 = arith.constant 0 : index
    %c0_10 = arith.constant 0 : index
    %17 = vector.load %arg6[%c0_8, %c0_9, %c0_10] : memref<4x26x146xf32, #tpu.memory_space<vmem>>, vector<4x26x146xf32>
    tpu.vector_store %arg6[%c0_8, %c0_9, %c0_10], %16 {strides = array<i32>} : memref<4x26x146xf32, #tpu.memory_space<vmem>>, vector<4x26x146xf32>,
    %c0_11 = arith.constant 0 : index
    %c8 = arith.constant 8 : index
    %c128 = arith.constant 128 : index
    %18 = vector.load %arg6[%c0_11, %c8, %c128] : memref<4x26x146xf32, #tpu.memory_space<vmem>>, vector<4x16x16xf32>
    tpu.vector_store %arg6[%c0_11, %c8, %c128], %1 {strides = array<i32>} : memref<4x26x146xf32, #tpu.memory_space<vmem>>, vector<4x16x16xf32>,
    %c0_12 = arith.constant 0 : index
    %c0_13 = arith.constant 0 : index
    %c0_14 = arith.constant 0 : index
    %19 = vector.load %arg6[%c0_12, %c0_13, %c0_14] : memref<4x26x146xf32, #tpu.memory_space<vmem>>, vector<4x26x146xf32>
    %c0_15 = arith.constant 0 : index
    %c0_16 = arith.constant 0 : index
    %c0_17 = arith.constant 0 : index
    %20 = vector.load %arg3[%c0_15, %c0_16, %c0_17] : memref<4x3x3xf32, #tpu.memory_space<vmem>>, vector<4x3x3xf32>
    %cst_18 = arith.constant 0.000000e+00 : f32
    %21 = vector.broadcast %cst_18 : f32 to vector<4x16x16xf32>
    %22 = vector.extract_strided_slice %20 {offsets = [0, 0, 0], sizes = [4, 1, 1], strides = [1, 1, 1]} : vector<4x3x3xf32> to vector<4x1x1xf32>
    %23 = vector.extract_strided_slice %19 {offsets = [0, 7, 127], sizes = [4, 16, 16], strides = [1, 1, 1]} : vector<4x26x146xf32> to vector<4x16x16xf32>
    %24 = vector.broadcast %22 : vector<4x1x1xf32> to vector<4x16x16xf32>
    %25 = arith.mulf %24, %23 : vector<4x16x16xf32>
    %26 = arith.addf %21, %25 : vector<4x16x16xf32>
    %27 = vector.extract_strided_slice %20 {offsets = [0, 0, 1], sizes = [4, 1, 1], strides = [1, 1, 1]} : vector<4x3x3xf32> to vector<4x1x1xf32>
    %28 = vector.extract_strided_slice %19 {offsets = [0, 7, 128], sizes = [4, 16, 16], strides = [1, 1, 1]} : vector<4x26x146xf32> to vector<4x16x16xf32>
    %29 = vector.broadcast %27 : vector<4x1x1xf32> to vector<4x16x16xf32>
    %30 = arith.mulf %29, %28 : vector<4x16x16xf32>
    %31 = arith.addf %26, %30 : vector<4x16x16xf32>
    %32 = vector.extract_strided_slice %20 {offsets = [0, 0, 2], sizes = [4, 1, 1], strides = [1, 1, 1]} : vector<4x3x3xf32> to vector<4x1x1xf32>
    %33 = vector.extract_strided_slice %19 {offsets = [0, 7, 129], sizes = [4, 16, 16], strides = [1, 1, 1]} : vector<4x26x146xf32> to vector<4x16x16xf32>
    %34 = vector.broadcast %32 : vector<4x1x1xf32> to vector<4x16x16xf32>
    %35 = arith.mulf %34, %33 : vector<4x16x16xf32>
    %36 = arith.addf %31, %35 : vector<4x16x16xf32>
    %37 = vector.extract_strided_slice %20 {offsets = [0, 1, 0], sizes = [4, 1, 1], strides = [1, 1, 1]} : vector<4x3x3xf32> to vector<4x1x1xf32>
    %38 = vector.extract_strided_slice %19 {offsets = [0, 8, 127], sizes = [4, 16, 16], strides = [1, 1, 1]} : vector<4x26x146xf32> to vector<4x16x16xf32>
    %39 = vector.broadcast %37 : vector<4x1x1xf32> to vector<4x16x16xf32>
    %40 = arith.mulf %39, %38 : vector<4x16x16xf32>
    %41 = arith.addf %36, %40 : vector<4x16x16xf32>
    %42 = vector.extract_strided_slice %20 {offsets = [0, 1, 1], sizes = [4, 1, 1], strides = [1, 1, 1]} : vector<4x3x3xf32> to vector<4x1x1xf32>
    %43 = vector.extract_strided_slice %19 {offsets = [0, 8, 128], sizes = [4, 16, 16], strides = [1, 1, 1]} : vector<4x26x146xf32> to vector<4x16x16xf32>
    %44 = vector.broadcast %42 : vector<4x1x1xf32> to vector<4x16x16xf32>
    %45 = arith.mulf %44, %43 : vector<4x16x16xf32>
    %46 = arith.addf %41, %45 : vector<4x16x16xf32>
    %47 = vector.extract_strided_slice %20 {offsets = [0, 1, 2], sizes = [4, 1, 1], strides = [1, 1, 1]} : vector<4x3x3xf32> to vector<4x1x1xf32>
    %48 = vector.extract_strided_slice %19 {offsets = [0, 8, 129], sizes = [4, 16, 16], strides = [1, 1, 1]} : vector<4x26x146xf32> to vector<4x16x16xf32>
    %49 = vector.broadcast %47 : vector<4x1x1xf32> to vector<4x16x16xf32>
    %50 = arith.mulf %49, %48 : vector<4x16x16xf32>
    %51 = arith.addf %46, %50 : vector<4x16x16xf32>
    %52 = vector.extract_strided_slice %20 {offsets = [0, 2, 0], sizes = [4, 1, 1], strides = [1, 1, 1]} : vector<4x3x3xf32> to vector<4x1x1xf32>
    %53 = vector.extract_strided_slice %19 {offsets = [0, 9, 127], sizes = [4, 16, 16], strides = [1, 1, 1]} : vector<4x26x146xf32> to vector<4x16x16xf32>
    %54 = vector.broadcast %52 : vector<4x1x1xf32> to vector<4x16x16xf32>
    %55 = arith.mulf %54, %53 : vector<4x16x16xf32>
    %56 = arith.addf %51, %55 : vector<4x16x16xf32>
    %57 = vector.extract_strided_slice %20 {offsets = [0, 2, 1], sizes = [4, 1, 1], strides = [1, 1, 1]} : vector<4x3x3xf32> to vector<4x1x1xf32>
    %58 = vector.extract_strided_slice %19 {offsets = [0, 9, 128], sizes = [4, 16, 16], strides = [1, 1, 1]} : vector<4x26x146xf32> to vector<4x16x16xf32>
    %59 = vector.broadcast %57 : vector<4x1x1xf32> to vector<4x16x16xf32>
    %60 = arith.mulf %59, %58 : vector<4x16x16xf32>
    %61 = arith.addf %56, %60 : vector<4x16x16xf32>
    %62 = vector.extract_strided_slice %20 {offsets = [0, 2, 2], sizes = [4, 1, 1], strides = [1, 1, 1]} : vector<4x3x3xf32> to vector<4x1x1xf32>
    %63 = vector.extract_strided_slice %19 {offsets = [0, 9, 129], sizes = [4, 16, 16], strides = [1, 1, 1]} : vector<4x26x146xf32> to vector<4x16x16xf32>
    %64 = vector.broadcast %62 : vector<4x1x1xf32> to vector<4x16x16xf32>
    %65 = arith.mulf %64, %63 : vector<4x16x16xf32>
    %66 = arith.addf %61, %65 : vector<4x16x16xf32>
    %c0_19 = arith.constant 0 : index
    %c0_20 = arith.constant 0 : index
    %c0_21 = arith.constant 0 : index
    %67 = vector.load %arg4[%c0_19, %c0_20, %c0_21] : memref<4x1x1xf32, #tpu.memory_space<vmem>>, vector<4x1x1xf32>
    %68 = vector.broadcast %67 : vector<4x1x1xf32> to vector<4x16x16xf32>
    %69 = arith.addf %66, %68 : vector<4x16x16xf32>
    %cst_22 = arith.constant 0.000000e+00 : f32
    %70 = vector.broadcast %cst_22 : f32 to vector<4x16x16xf32>
    %71 = arith.maximumf %69, %70 : vector<4x16x16xf32>
    %72 = arith.addf %15, %71 : vector<4x16x16xf32>
    %c0_23 = arith.constant 0 : index
    %c0_24 = arith.constant 0 : index
    %c0_25 = arith.constant 0 : index
    %c0_26 = arith.constant 0 : index
    %73 = vector.load %arg5[%c0_23, %c0_24, %c0_25, %c0_26] : memref<1x4x16x16xf32, #tpu.memory_space<vmem>>, vector<1x4x16x16xf32>
    %74 = vector.shape_cast %73 : vector<1x4x16x16xf32> to vector<4x16x16xf32>
    %75 = vector.shape_cast %72 : vector<4x16x16xf32> to vector<1x4x16x16xf32>
    tpu.vector_store %arg5[%c0_23, %c0_24, %c0_25, %c0_26], %75 {strides = array<i32>} : memref<1x4x16x16xf32, #tpu.memory_space<vmem>>, vector<1x4x16x16xf32>,
    return
  }
  func.func @transform_0(%arg0: i32, %arg1: i32) -> (i32, i32, i32, i32) {
    %c0_i32 = arith.constant 0 : i32
    %c0_i32_0 = arith.constant 0 : i32
    %c0_i32_1 = arith.constant 0 : i32
    return %arg0, %arg1, %c0_i32, %c0_i32_0 : i32, i32, i32, i32
  }
  func.func @transform_1(%arg0: i32, %arg1: i32) -> (i32, i32, i32) {
    %c0_i32 = arith.constant 0 : i32
    %c0_i32_0 = arith.constant 0 : i32
    %c0_i32_1 = arith.constant 0 : i32
    return %arg1, %c0_i32, %c0_i32_0 : i32, i32, i32
  }
  func.func @transform_2(%arg0: i32, %arg1: i32) -> (i32, i32, i32) {
    %c0_i32 = arith.constant 0 : i32
    %c0_i32_0 = arith.constant 0 : i32
    %c0_i32_1 = arith.constant 0 : i32
    return %arg1, %c0_i32, %c0_i32_0 : i32, i32, i32
  }
  func.func @transform_3(%arg0: i32, %arg1: i32) -> (i32, i32, i32, i32) {
    %c0_i32 = arith.constant 0 : i32
    %c0_i32_0 = arith.constant 0 : i32
    %c0_i32_1 = arith.constant 0 : i32
    return %arg0, %arg1, %c0_i32, %c0_i32_0 : i32, i32, i32, i32
  }
}

</mosaic_0001>

<bundles_post_ra>
// kernel: tpu_custom_call.1
= control target key start
LH: loop header
LB: loop body
LE: loop exit
PB: predicated region body
PF: predicated region fallthrough
CT: control target
= control target key end

     0   :  { %s4469_s0 = inlined_call_operand.hbm [shape: f32[2,4,16,16], index: 0, kind: input, shape index: {}]   ;;  %s4470_s1 = inlined_call_operand.vmem [shape: f32[4,3,3], index: 1, kind: input, shape index: {}]   ;;  %s4471_s2 = inlined_call_operand.vmem [shape: f32[4,1,1], index: 2, kind: input, shape index: {}]   ;;  %s4472_s3 = inlined_call_operand.hbm [shape: f32[2,4,16,16], index: 3, kind: output, shape index: {}]  }
   0x1   :  { %4534 = sst [smem:[#allocation42_spill]] %s4469_s0 }
   0x2   :  { %4535 = sst [smem:[#allocation43_spill]] %s4470_s1 }
   0x3   :  { %8 = vsyncpa [#allocation4], 0 }
   0x4   :  { %10 = vsyncpa [#allocation4 + $0x1], 0 }
   0x5   :  { %11 = vsyncpa [#allocation5], 0 }
   0x6   :  { %13 = vsyncpa [#allocation5 + $0x1], 0  ;;  %s2933_s12 = smov 0   ;;  %s2935_s13 = smov 0  }
   0x7   :  { %s2937_s14 = smov 0   ;;  %s2939_s15 = smov 0  }
   0x8   :  { %s2941_s16 = smov 0   ;;  %s2943_s17 = smov 0  }
   0x9 LB: > { %4536 = sst [smem:[#allocation9_spill]] %s2884_s13  ;;  %s2433_s18 = sadd.s32 4294967295, %s2900_s17   ;;  %s2900_s17 = sphi %s2943_s17, %s19_s17   ;;  %s2896_s16 = sphi %s2941_s16, %s4663_s16   ;;  %s2892_s15 = sphi %s2939_s15, %s4662_s15   ;;  %s2888_s14 = sphi %s2937_s14, %s4661_s14   ;;  %s2884_s13 = sphi %s2935_s13, %s4660_s13   ;;  %s2880_s12 = sphi %s2933_s12, %s4659_s12  }
   0xa   : > { %4537 = sst [smem:[#allocation10_spill]] %s2888_s14  ;;  %s2434_s19 = sadd.s32 4294967294, %s2900_s17  }
   0xb   : > { %4538 = sst [smem:[#allocation11_spill]] %s2896_s16  ;;  %s31_s20 = sadd.s32 1, %s2896_s16 }
   0xc   : > { %s40_s21 = sadd.s32 1, %s2888_s14  ;;  %p33_p0 = scmp.ge.s32.totalorder %s31_s20, 2 }
   0xd   : > { %p47_p1 = scmp.ne.s32.totalorder %s2888_s14, %s2884_s13  ;;  %p48_p2 = scmp.eq.s32.totalorder %s2900_s17, 0 }
   0xe   : > { %p53_p3 = scmp.ne.s32.totalorder %s2884_s13, %s2880_s12  ;;  %s4665_s20 = smov (%p33_p0, %s31_s20), 0 }
   0xf   : > { %4539 = sst [smem:[#allocation12_spill]] %s4665_s20  ;;  %p2974_p4 = por %p48_p2, %p47_p1 }
  0x10   : > { %p54_p5 = scmp.eq.s32.totalorder %s2433_s18, 0  ;;  %s35_s23 = ssub.s32 %s2896_s16, %s4665_s20 }
  0x11   : > { %p131_p6 = scmp.eq.s32.totalorder %s2433_s18, 1  ;;  %p38_p7 = scmp.eq.s32.totalorder %s35_s23, 0 }
  0x12   : > { %p2980_p8 = por %p54_p5, %p53_p3  ;;  %p137_p10 = scmp.eq.s32.totalorder %s2434_s19, 1 }
  0x13   : > { %p2984_p9 = por %p131_p6, %p47_p1  ;;  %p2692_p13 = scmp.lt.s32.totalorder %s2900_s17, 2 }
  0x14   : > { %s2989_s26 = scalar_select %p38_p7, %s2888_s14, %s40_s21  }
  0x15   : > { %s4542_s25 = scalar_select %p2984_p9, 1, 0 }
  0x16   : > { %4543 = sst [smem:[#allocation13_spill]] %s2989_s26  ;;  %p2991_p11 = por %p137_p10, %p53_p3 }
  0x17   : > { %s174_s28 = sand.u32 1, %s2888_s14   ;;  %s2478_s30 = sshll.u32 %s2896_s16, 10 }
  0x18   : > { %s4544_s27 = scalar_select %p2991_p11, 1, 0 }
  0x19   : > { %s2439_s29 = sshll.u32 %s174_s28, 6  ;;  %s4545_s0 = sld [smem:[#allocation42_spill]] }
  0x1a   : > { %s178_s7 = scalar_lea.vmem [#allocation3], %s2439_s29  ;;  %p3008_p0 = pnand %p2692_p13, %p2974_p4 }
  0x1b   : > { %s188_s8 = sshll.u32 %s178_s7, 4  ;;  %s3013_s10 = scalar_lea.sflag [#allocation4], %s174_s28  ;;  %s3004_s8 = int_to_ptr.vmem [resolvable:$true] %s188_s8 }
  0x1c   : > { %p2790_p3 = pneg %p3008_p0 }
  0x1f   : > { %s3002_s6 = scalar_lea.hbm %s4545_s0, %s2478_s30  ;;  %s2793_s21 = scalar_lea.hbm %s4545_s0, 2048 }
  0x20   : > { %s2788_s11 = scalar_lea.hbm %s3002_s6, 1024  ;;  %p2794_p4 = scmp.lt.u32.totalorder %s3002_s6, %s4545_s0 }
  0x21   : > { %p2789_p2 = scmp.ne.s32.totalorder %s3002_s6, %s2788_s11  ;;  %p2795_p7 = scmp.lt.u32.totalorder %s2793_s21, %s2788_s11 }
  0x22   : > { %p2797_p13 = scmp.lt.u32.totalorder %s2788_s11, %s3002_s6 }
  0x23   : > { %p2791_p5 = pnand %p2790_p3, %p2789_p2  ;;  %p2796_p10 = por %p2795_p7, %p2794_p4 }
  0x25   : > { %p2792_p6 = pneg %p2791_p5  ;;  %p2798_p12 = por %p2797_p13, %p2796_p10 }
  0x27   : > { %p2799_p1 = pnand %p2798_p12, %p2792_p6 }
  0x29   : > { %2802 = shalt.err (!%p2799_p1)
}
  0x2a   : > { %s2803_s28 = scalar_lea.vmem %s3004_s8, 1024  ;;  %s2902_s29 = smov [#allocation3]  }
  0x2b   : > { %p2804_p2 = scmp.ne.s32.totalorder %s3004_s8, %s2803_s28  ;;  %s2808_s30 = sshll.u32 %s2902_s29, 4  ;;  %s2809_s30 = int_to_ptr.vmem [resolvable:$false] %s2808_s30 }
  0x2c   : > { %s2810_s4 = scalar_lea.vmem %s2809_s30, 2048  ;;  %p2811_p9 = scmp.lt.s32.totalorder %s3004_s8, %s2809_s30 }
  0x2d   : > { %p2806_p5 = pnand %p2804_p2, %p2790_p3  ;;  %p2812_p4 = scmp.lt.s32.totalorder %s2810_s4, %s2803_s28 }
  0x2f   : > { %p2807_p11 = pneg %p2806_p5  ;;  %p2813_p7 = por %p2812_p4, %p2811_p9 }
  0x31   : > { %p2814_p10 = pnand %p2813_p7, %p2807_p11 }
  0x33   : > { %2817 = shalt.err (!%p2814_p10)
}
  0x34   : > { %s2903_s5 = smov 128   ;;  %s2904_s7 = smov 8  }
  0x35   : > { %2687 = dma.hbm_to_vmem [thread:$0]  (!%p3008_p0), %s3002_s6, 1024, %s3004_s8, %s3013_s10, %s2903_s5, %s2903_s5, %s2904_s7  }
  0x36   : > { %p196_p12 = scmp.lt.s32.totalorder %s2900_s17, 3  ;;  %p4547_p1 = scmp.ge.s32.totalorder %s2900_s17, 1 }
  0x38   : > { %p197_p3 = pnand %p4547_p1, %p196_p12 }
  0x3a   : > { %200 = sbr.rel (%p197_p3) target bundleno = 958 (0x3be), region = 32 }
  0x41   : > { %s3045_s11 = sand.u32 1, %s2884_s13  }
  0x42   : > { %s4474_s18 = sshll.u32 %s3045_s11, 6  ;;  %s203_s19 = scalar_lea.sflag [#allocation4], %s3045_s11 }
  0x43   : > { %s3051_s21 = scalar_lea.vmem [#allocation3], %s4474_s18 }
  0x44   : > { %2871 = dma.done.wait (%p2980_p8), %s203_s19, 1024  }
  0x45   : > { %2873 = vsyncadd (%p2980_p8), %s203_s19, 4294966272  ;;  %vm681_vm0 = vcmask 146432   ;;  %v2905_v0 = vmov 0.0   ;;  %vm259_vm1 = vcmask 130048   ;;  %v251_v2 = vld [vmem:[%s3051_s21] sm:$0xff]  ;;  %v252_v3 = vld [vmem:[%s3051_s21 + $0x8] sm:$0xff] }
  0x46   : > { %684 = vst.msk [vmem:[#allocation2 + $0x18] sm:$0xff] %vm681_vm0, %v2905_v0  ;;  %686 = vst.msk [vmem:[#allocation2 + $0x28] sm:$0xff] %vm681_vm0, %v2905_v0  ;;  %v253_v4 = vld [vmem:[%s3051_s21 + $0x10] sm:$0xff]  ;;  %v2568_v5 = vpack.c.bf16 %v252_v3, %v251_v2  ;;  %v254_v6 = vld [vmem:[%s3051_s21 + $0x18] sm:$0xff]  ;;  %2516 = vmatprep.mubr.msk.f32.mxu0 %vm259_vm1, %v251_v2  ;;  %s4550_s1 = sld [smem:[#allocation43_spill]]  ;;  %s4479_s8 = smov 127  }
  0x47   : > { %680 = vst [vmem:[#allocation2] sm:$0xff] %v2905_v0  ;;  %682 = vst.msk [vmem:[#allocation2 + $0x8] sm:$0xff] %vm681_vm0, %v2905_v0  ;;  %2523 = vmatprep.mubr.msk.f32.mxu1 %vm259_vm1, %v253_v4  ;;  %v257_v7 = vld [vmem:[%s3051_s21 + $0x30] sm:$0xff]  ;;  %v258_v8 = vld [vmem:[%s3051_s21 + $0x38] sm:$0xff]  ;;  %v2574_v9 = vpack.c.bf16 %v254_v6, %v253_v4  ;;  %s4475_s30 = smov 126   ;;  %vm688_vm3 = vcmask 140288  }
  0x48   : > { %687 = vst [vmem:[#allocation2 + $0x30] sm:$0x3] %v2905_v0  ;;  %691 = vst.msk [vmem:[#allocation2 + $0x48] sm:$0xff] %vm681_vm0, %v2905_v0  ;;  %v3104_v10 = vpack.c.bf16 %v258_v8, %v257_v7  ;;  %v255_v11 = vld [vmem:[%s3051_s21 + $0x20] sm:$0xff]  ;;  %v256_v12 = vld [vmem:[%s3051_s21 + $0x28] sm:$0xff]  ;;  %s4551_s26 = smov 126  }
  0x49   : > { %693 = vst.msk [vmem:[#allocation2 + $0x58] sm:$0xff] %vm681_vm0, %v2905_v0  ;;  %695 = vst.msk [vmem:[#allocation2 + $0x68] sm:$0xff] %vm681_vm0, %v2905_v0  ;;  %v3117_v14 = vpack.c.bf16 %v256_v12, %v255_v11  ;;  %vm1431_vm4 = vcmask 1045504   ;;  %vm1078_vm5 = vcmask 1046528   ;;  %vm1862_vm6 = vcmask 1040384   ;;  %p4656_p9 = scmp.ne.s32.totalorder %s4542_s25, 0 }
  0x4a   : > { %696 = vst [vmem:[#allocation2 + $0x70] sm:$0x3] %v2905_v0  ;;  %699 = vst.msk [vmem:[#allocation2 + $0x88] sm:$0xff] %vm681_vm0, %v2905_v0  ;;  %vm1881_vm7 = vcmask 7168  }
  0x4b   : > { %701 = vst.msk [vmem:[#allocation2 + $0x98] sm:$0xff] %vm681_vm0, %v2905_v0  ;;  %703 = vst.msk [vmem:[#allocation2 + $0xa8] sm:$0xff] %vm681_vm0, %v2905_v0 }
  0x4c   : > { %704 = vst [vmem:[#allocation2 + $0xb0] sm:$0x3] %v2905_v0  ;;  %707 = vst.msk [vmem:[#allocation2 + $0xc8] sm:$0xff] %vm681_vm0, %v2905_v0  ;;  %v3113_v13 = vld [vmem:[%s4550_s1] sm:$0x7] }
  0x4d   : > { %709 = vst.msk [vmem:[#allocation2 + $0xd8] sm:$0xff] %vm681_vm0, %v2905_v0  ;;  %711 = vst.msk [vmem:[#allocation2 + $0xe8] sm:$0xff] %vm681_vm0, %v2905_v0  ;;  %822 = vrot.lane.b32.xlu0 %v3113_v13, %s4479_s8  ;;  %v3126_v15 = vld [vmem:[%s4550_s1 + $0x4] sm:$0x7]  ;;  %v3136_v16 = vld [vmem:[%s4550_s1 + $0x8] sm:$0x7] }
  0x4e   : > { %712 = vst [vmem:[#allocation2 + $0xf0] sm:$0x3] %v2905_v0  ;;  %vm3088_vm2 = vmpackc.low %vm259_vm1, %vm259_vm1  ;;  %v3147_v17 = vld [vmem:[%s4550_s1 + $0xc] sm:$0x7]  ;;  %824 = vrot.lane.b32.xlu1 %v3126_v15, %s4479_s8  ;;  %v1030_v18 = vrot.slane %v3113_v13, 1  ;;  %v3177_v19 = vrot.slane %v3136_v16, 1 }
  0x4f   : > { %714 = vst.msk [vmem:[#allocation2 + $0x18] sm:$0xff] %vm259_vm1, %v251_v2  ;;  %715 = vst.msk [vmem:[#allocation2 + $0x28] sm:$0xff] %vm259_vm1, %v252_v3  ;;  %2570 = vmatprep.subr.msk.bf16.mxu0 %vm3088_vm2, %v2568_v5  ;;  %2576 = vmatprep.subr.msk.bf16.mxu1 %vm3088_vm2, %v2574_v9  ;;  %v1031_v20 = vrot.slane %v3126_v15, 1  ;;  %v3193_v21 = vrot.slane %v3147_v17, 1  ;;  %v3233_v58 = vrot.slane %v3113_v13, 2  ;;  %v3240_v59 = vrot.slane %v3136_v16, 2 }
  0x50   : > { %716 = vst.msk [vmem:[#allocation2 + $0x58] sm:$0xff] %vm259_vm1, %v253_v4  ;;  %717 = vst.msk [vmem:[#allocation2 + $0x68] sm:$0xff] %vm259_vm1, %v254_v6  ;;  %2573 = vmatpush3.bf16.xpose.msk.msra.mxu0 %vm3088_vm2, %v2568_v5  ;;  %2579 = vmatpush3.bf16.xpose.msk.msra.mxu1 %vm3088_vm2, %v2574_v9  ;;  %v3252_v60 = vld [vmem:[#allocation2 + $0x8] sm:$0xff]  ;;  %v3267_v4 = vrot.slane %v3126_v15, 2 }
  0x51   : > { %720 = vst.msk [vmem:[#allocation2 + $0xd8] sm:$0xff] %vm259_vm1, %v257_v7  ;;  %721 = vst.msk [vmem:[#allocation2 + $0xe8] sm:$0xff] %vm259_vm1, %v258_v8  ;;  %2582 = vmatprep.subr.msk.bf16.mxu0 %vm3088_vm2, %v3117_v14  ;;  %2588 = vmatprep.subr.msk.bf16.mxu1 %vm3088_vm2, %v3104_v10 }
  0x52   : > { %718 = vst.msk [vmem:[#allocation2 + $0x98] sm:$0xff] %vm259_vm1, %v255_v11  ;;  %719 = vst.msk [vmem:[#allocation2 + $0xa8] sm:$0xff] %vm259_vm1, %v256_v12  ;;  %926 = vrot.lane.b32.xlu0 %v3113_v13, %s4475_s30  ;;  %826 = vrot.lane.b32.xlu1 %v3136_v16, %s4479_s8 }
  0x53   : > { %2608 = vpush %v3113_v13 }
  0x54   : > { %2610 = vpush %v3126_v15 }
  0x55   : > { %2612 = vpush %v3136_v16 }
  0x56   : > { %2614 = vpush %v3147_v17  ;;  %930 = vrot.lane.b32.xlu0 %v3136_v16, %s4475_s30  ;;  %828 = vrot.lane.b32.xlu1 %v3147_v17, %s4479_s8  ;;  %v3257_v63 = vld [vmem:[#allocation2 + $0x28] sm:$0xff] }
  0x57   : > { %2517 = vmatmul.mubr.msk.f32.vlgmr.msra.gmra.mrb[0].mxu0 %vm259_vm1, %v252_v3  ;;  %2524 = vmatmul.mubr.msk.f32.vlgmr.msra.gmra.mrb[0].mxu1 %vm259_vm1, %v254_v6  ;;  %v3278_v6 = vld [vmem:[#allocation2 + $0x18] sm:$0xff]  ;;  %689 = vst.msk [vmem:[#allocation2 + $0x38] sm:$0x3] %vm688_vm3, %v2905_v0  ;;  %697 = vst.msk [vmem:[#allocation2 + $0x78] sm:$0x3] %vm688_vm3, %v2905_v0 }
  0x58   : > { %2585 = vmatpush3.bf16.xpose.msk.msra.mxu0 %vm3088_vm2, %v3117_v14  ;;  %2591 = vmatpush3.bf16.xpose.msk.msra.mxu1 %vm3088_vm2, %v3104_v10  ;;  %705 = vst.msk [vmem:[#allocation2 + $0xb8] sm:$0x3] %vm688_vm3, %v2905_v0  ;;  %713 = vst.msk [vmem:[#allocation2 + $0xf8] sm:$0x3] %vm688_vm3, %v2905_v0 }
  0x59   : > { %2537 = vmatprep.mubr.msk.f32.mxu1 %vm259_vm1, %v257_v7  ;;  %2530 = vmatprep.mubr.msk.f32.mxu0 %vm259_vm1, %v255_v11 }
  0x5a   : > { %1151 = vrot.lane.b32.xlu0 %v1030_v18, %s4479_s8  ;;  %2593 = vmatprep.subr.bf16.mxu0 %v2568_v5 }
  0x5b   : > { %2597 = vmatprep.subr.bf16.mxu1 %v2574_v9  ;;  %928 = vrot.lane.b32.xlu1 %v3126_v15, %s4475_s30 }
  0x5e   : > { %1155 = vrot.lane.b32.xlu0 %v3177_v19, %s4479_s8 }
  0x5f   : > { %2531 = vmatmul.mubr.msk.f32.vlgmr.msra.gmra.mrb[2].mxu0 %vm259_vm1, %v256_v12  ;;  %2538 = vmatmul.mubr.msk.f32.vlgmr.msra.gmra.mrb[2].mxu1 %vm259_vm1, %v258_v8  ;;  %v3283_v8 = vld [vmem:[#allocation2 + $0x48] sm:$0xff] }
  0x60   : > { %2595 = vmatpush3.bf16.msra.mxu0 %v2568_v5  ;;  %2599 = vmatpush3.bf16.msra.mxu1 %v2574_v9  ;;  %v3272_v5 = vrot.slane %v3147_v17, 2 }
  0x61   : > { %2601 = vmatprep.subr.bf16.mxu0 %v3117_v14  ;;  %932 = vrot.lane.b32.xlu1 %v3147_v17, %s4475_s30 }
  0x62   : > { %2605 = vmatprep.subr.bf16.mxu1 %v3104_v10  ;;  %1259 = vrot.lane.b32.xlu0 %v1030_v18, %s4475_s30 }
  0x65   : > { %1153 = vrot.lane.b32.xlu1 %v1031_v20, %s4479_s8 }
  0x69   : > { %1157 = vrot.lane.b32.xlu1 %v3193_v21, %s4479_s8 }
  0x6d   : > { %1261 = vrot.lane.b32.xlu1 %v1031_v20, %s4475_s30 }
  0x84   : > { %s3235_s4 = spop %2608 }
  0x85   : > { %s3242_s5 = spop %2610 }
  0x86   : > { %s3244_s7 = spop %2612 }
  0x87   : > { %s3248_s19 = spop %2614 }
  0xbf   : > { %v823_v22 = vpop.permute.xlu0 %822 }
  0xc0   : > { %2616 = vpush %v823_v22  ;;  %v825_v23 = vpop.permute.xlu1 %824 }
  0xc1   : > { %2618 = vpush %v825_v23 }
  0xc4   : > { %v827_v24 = vpop.permute.xlu1 %826  ;;  %v927_v27 = vpop.permute.xlu0 %926 }
  0xc5   : > { %2620 = vpush %v827_v24 }
  0xc8   : > { %v829_v25 = vpop.permute.xlu1 %828  ;;  %v931_v29 = vpop.permute.xlu0 %930 }
  0xc9   : > { %2622 = vpush %v829_v25 }
  0xca   : > { %2624 = vpush %v927_v27 }
  0xcc   : > { %v1152_v31 = vpop.permute.xlu0 %1151 }
  0xcd   : > { %v929_v26 = vpop.permute.xlu1 %928 }
  0xce   : > { %2626 = vpush %v929_v26 }
  0xcf   : > { %2628 = vpush %v931_v29  ;;  %v2908_v29 = vmov 0  }
  0xd0   : > { %v1156_v33 = vpop.permute.xlu0 %1155  ;;  %2751 = vset.pattern.permute.xlu0 %v2908_v29  ;;  %2752 = vset.pattern.permute.xlu1 %v2908_v29 }
  0xd3   : > { %v933_v28 = vpop.permute.xlu1 %932 }
  0xd4   : > { %2630 = vpush %v933_v28  ;;  %v1260_v35 = vpop.permute.xlu0 %1259 }
  0xd5   : > { %2632 = vpush %v1030_v18 }
  0xd6   : > { %2634 = vpush %v1031_v20 }
  0xd7   : > { %v1154_v30 = vpop.permute.xlu1 %1153  ;;  %2636 = vpush %v3177_v19 }
  0xd8   : > { %2638 = vpush %v3193_v21 }
  0xd9   : > { %2640 = vpush %v1152_v31 }
  0xda   : > { %2642 = vpush %v1154_v30 }
  0xdb   : > { %v1158_v32 = vpop.permute.xlu1 %1157  ;;  %2644 = vpush %v1156_v33 }
  0xdc   : > { %2646 = vpush %v1158_v32 }
  0xdd   : > { %2648 = vpush %v1260_v35 }
  0xdf   : > { %v1262_v34 = vpop.permute.xlu1 %1261 }
  0xe0   : > { %2650 = vpush %v1262_v34 }
  0xf1   : > { %s2617_s21 = spop %2616 }
  0xf2   : > { %v831_v61 = vstv %s2617_s21  ;;  %s2619_s24 = spop %2618 }
  0xf3   : > { %v842_v62 = vmul.f32 %v831_v61, %v3252_v60  ;;  %v844_v1 = vmul.f32 %v831_v61, %v3257_v63  ;;  %v843_v7 = vmul.f32 %v831_v61, %v3278_v6  ;;  %v3285_v9 = vstv %s2619_s24 }
  0xf4   : > { %v845_v11 = vmul.f32 %v3285_v9, %v3283_v8 }
  0xf6   : > { %s2621_s6 = spop %2620 }
  0xfa   : > { %s2623_s9 = spop %2622 }
  0xfb   : > { %s2625_s10 = spop %2624 }
  0xff   : > { %s3334_s22 = spop %2626 }
 0x100   : > { %s3336_s23 = spop %2628 }
 0x105   : > { %s3340_s28 = spop %2630 }
 0x106   : > { %s3342_s29 = spop %2632 }
 0x107   : > { %s3350_s21 = spop %2634 }
 0x108   : > { %s3353_s24 = spop %2636 }
 0x109   : > { %s3359_s18 = spop %2638 }
 0x12a   : > { %v2518_v36 = vpop.f32.mrb[0].mxu0  ;;  %v2525_v38 = vpop.f32.mrb[0].mxu1 }
 0x12b   : > { %v3200_v37 = vmul.f32 0.125, %v2518_v36  ;;  %v332_v39 = vpop.f32.mrb[1].mxu0  ;;  %v413_v41 = vpop.f32.mrb[1].mxu1  ;;  %v3204_v42 = vmul.f32 0.125, %v2525_v38 }
 0x12c   : > { %v3202_v40 = vmul.f32 0.125, %v332_v39  ;;  %v3208_v44 = vmul.f32 0.125, %v413_v41 }
 0x12d   : > { %v595_v43 = vsel %vm259_vm1, %v3200_v37, -inf  ;;  %v601_v46 = vsel %vm259_vm1, %v3204_v42, -inf }
 0x12e   : > { %596 = vmax.xlane.f32.xlu1 %v595_v43  ;;  %v592_v45 = vsel %vm259_vm1, %v3202_v40, -inf  ;;  %v598_v47 = vsel %vm259_vm1, %v3208_v44, -inf }
 0x12f   : > { %593 = vmax.xlane.f32.xlu0 %v592_v45 }
 0x132   : > { %602 = vmax.xlane.f32.xlu1 %v601_v46  ;;  %v2532_v48 = vpop.f32.mrb[2].mxu0  ;;  %v2539_v49 = vpop.f32.mrb[2].mxu1 }
 0x133   : > { %599 = vmax.xlane.f32.xlu0 %v598_v47  ;;  %v3216_v50 = vmul.f32 0.125, %v2532_v48  ;;  %v494_v51 = vpop.f32.mrb[3].mxu0  ;;  %v3218_v52 = vmul.f32 0.125, %v2539_v49  ;;  %v575_v53 = vpop.f32.mrb[3].mxu1 }
 0x134   : > { %v3220_v54 = vmul.f32 0.125, %v494_v51  ;;  %v3261_v2 = vmul.f32 0.125, %v575_v53  ;;  %v3338_v51 = vld [vmem:[#allocation2 + $0x58] sm:$0xff]  ;;  %v3346_v53 = vld [vmem:[#allocation2 + $0x88] sm:$0xff] }
 0x135   : > { %v607_v55 = vsel %vm259_vm1, %v3216_v50, -inf  ;;  %v613_v56 = vsel %vm259_vm1, %v3218_v52, -inf }
 0x136   : > { %614 = vmax.xlane.f32.xlu1 %v613_v56  ;;  %v604_v57 = vsel %vm259_vm1, %v3220_v54, -inf  ;;  %v610_v3 = vsel %vm259_vm1, %v3261_v2, -inf  ;;  %v3357_v56 = vld [vmem:[#allocation2 + $0xa8] sm:$0xff] }
 0x137   : > { %608 = vmax.xlane.f32.xlu0 %v607_v55 }
 0x13b   : > { %605 = vmax.xlane.f32.xlu0 %v604_v57 }
 0x147   : > { %1265 = vrot.lane.b32.xlu1 %v3193_v21, %s4475_s30 }
 0x151   : > { %1263 = vrot.lane.b32.xlu0 %v3177_v19, %s4475_s30 }
 0x155   : > { %1520 = vrot.lane.b32.xlu0 %v3233_v58, %s4479_s8 }
 0x159   : > { %1524 = vrot.lane.b32.xlu0 %v3240_v59, %s4479_s8 }
 0x15d   : > { %1644 = vrot.lane.b32.xlu0 %v3233_v58, %s4475_s30 }
 0x161   : > { %1648 = vrot.lane.b32.xlu0 %v3240_v59, %s4475_s30 }
 0x165   : > { %866 = vrot.lane.b32.xlu0 %v842_v62, %s4479_s8 }
 0x169   : > { %870 = vrot.lane.b32.xlu0 %v844_v1, %s4479_s8 }
 0x16b   : > { %611 = vmax.xlane.f32.xlu1 %v610_v3 }
 0x17c   : > { %1522 = vrot.lane.b32.xlu1 %v3267_v4, %s4479_s8 }
 0x180   : > { %1526 = vrot.lane.b32.xlu1 %v3272_v5, %s4479_s8 }
 0x184   : > { %1646 = vrot.lane.b32.xlu1 %v3267_v4, %s4475_s30 }
 0x188   : > { %1650 = vrot.lane.b32.xlu1 %v3272_v5, %s4475_s30  ;;  %s3362_s30 = spop %2640 }
 0x18c   : > { %868 = vrot.lane.b32.xlu1 %v843_v7, %s4479_s8 }
 0x190   : > { %872 = vrot.lane.b32.xlu1 %v845_v11, %s4479_s8 }
 0x1bb   : > { %v597_v12 = vpop.xlane.xlu1 %596 }
 0x1bc   : > { %v617_v13 = vsub.f32 %v3200_v37, %v597_v12  ;;  %v594_v15 = vpop.xlane.xlu0 %593 }
 0x1bd   : > { %v616_v16 = vsub.f32 %v3202_v40, %v594_v15 }
 0x1be   : > { %v626_v17 = vmul.f32 1.442695, %v617_v13 }
 0x1bf   : > { %v624_v18 = vmul.f32 1.442695, %v616_v16  ;;  %v603_v19 = vpop.xlane.xlu1 %602  ;;  %v3397_v16 = vstv %s3334_s22 }
 0x1c0   : > { %2753 = vpow2.f32 %v626_v17  ;;  %v619_v20 = vsub.f32 %v3204_v42, %v603_v19  ;;  %v600_v21 = vpop.xlane.xlu0 %599  ;;  %v3400_v17 = vstv %s3336_s23  ;;  %v3405_v19 = vld [vmem:[#allocation2 + $0x38] sm:$0x3] }
 0x1c1   : > { %v618_v22 = vsub.f32 %v3208_v44, %v600_v21  ;;  %2755 = vpow2.f32 %v624_v18  ;;  %v3403_v18 = vstv %s3340_s28 }
 0x1c2   : > { %v630_v23 = vmul.f32 1.442695, %v619_v20  ;;  %v728_v20 = vld [vmem:[#allocation2 + $0x30] sm:$0x3] }
 0x1c3   : > { %v628_v24 = vmul.f32 1.442695, %v618_v22  ;;  %v615_v25 = vpop.xlane.xlu1 %614  ;;  %v950_v22 = vmul.f32 %v3397_v16, %v3338_v51 }
 0x1c4   : > { %2757 = vpow2.f32 %v630_v23  ;;  %v609_v26 = vpop.xlane.xlu0 %608  ;;  %v623_v27 = vsub.f32 %v3218_v52, %v615_v25  ;;  %v846_v52 = vmul.f32 %v3285_v9, %v3338_v51 }
 0x1c5   : > { %v621_v28 = vsub.f32 %v3216_v50, %v609_v26  ;;  %2759 = vpow2.f32 %v628_v24 }
 0x1c6   : > { %v638_v30 = vmul.f32 1.442695, %v623_v27  ;;  %v952_v27 = vmul.f32 %v3400_v17, %v3346_v53 }
 0x1c7   : > { %v634_v31 = vmul.f32 1.442695, %v621_v28  ;;  %v1266_v39 = vpop.permute.xlu1 %1265  ;;  %v954_v28 = vmul.f32 %v3400_v17, %v3357_v56 }
 0x1c8   : > { %v606_v32 = vpop.xlane.xlu0 %605  ;;  %2761 = vpow2.f32 %v638_v30 }
 0x1c9   : > { %v620_v33 = vsub.f32 %v3220_v54, %v606_v32  ;;  %2763 = vpow2.f32 %v634_v31  ;;  %v3348_v54 = vstv %s2621_s6  ;;  %s3370_s6 = spop %2642  ;;  %v736_v32 = vld [vmem:[#allocation2 + $0x70] sm:$0x3] }
 0x1ca   : > { %v3298_v34 = vpop.eup %2753  ;;  %v848_v55 = vmul.f32 %v3348_v54, %v3346_v53  ;;  %v850_v57 = vmul.f32 %v3348_v54, %v3357_v56  ;;  %s3372_s0 = spop %2644 }
 0x1cb   : > { %v632_v35 = vmul.f32 1.442695, %v620_v33  ;;  %v643_v36 = vsel %vm259_vm1, %v3298_v34, 0.0  ;;  %v3306_v37 = vpop.eup %2755  ;;  %s3377_s1 = spop %2646  ;;  %v744_v33 = vld [vmem:[#allocation2 + $0xb0] sm:$0x3] }
 0x1cc   : > { %644 = vadd.xlane.f32.xlu0 %v643_v36  ;;  %v1264_v38 = vpop.permute.xlu0 %1263  ;;  %v640_v0 = vsel %vm259_vm1, %v3306_v37, 0.0  ;;  %s3382_s20 = spop %2648 }
 0x1cd   : > { %2765 = vpow2.f32 %v632_v35  ;;  %2652 = vpush %v1264_v38 }
 0x1ce   : > { %v3308_v40 = vpop.eup %2757  ;;  %2654 = vpush %v1266_v39 }
 0x1cf   : > { %v649_v41 = vsel %vm259_vm1, %v3308_v40, 0.0  ;;  %2656 = vpush %v3233_v58  ;;  %v3315_v42 = vpop.eup %2759  ;;  %v3366_v58 = vld [vmem:[#allocation2 + $0xd8] sm:$0xff] }
 0x1d0   : > { %650 = vadd.xlane.f32.xlu1 %v649_v41  ;;  %641 = vadd.xlane.f32.xlu0 %v640_v0  ;;  %2658 = vpush %v3267_v4  ;;  %v1521_v43 = vpop.permute.xlu0 %1520  ;;  %v646_v45 = vsel %vm259_vm1, %v3315_v42, 0.0  ;;  %v3380_v4 = vstv %s2625_s10  ;;  %v3419_v29 = vmul.f32 %v3403_v18, %v3366_v58  ;;  %v3428_v41 = vld [vmem:[#allocation2 + $0x78] sm:$0x3] }
 0x1d1   : > { %2660 = vpush %v3240_v59  ;;  %v3368_v59 = vstv %s2623_s9  ;;  %s3385_s9 = spop %2650  ;;  %v946_v11 = vmul.f32 %v3380_v4, %v3252_v60  ;;  %v948_v15 = vmul.f32 %v3380_v4, %v3257_v63  ;;  %v3430_v0 = vld [vmem:[#allocation2 + $0xb8] sm:$0x3] }
 0x1d2   : > { %2662 = vpush %v3272_v5  ;;  %v3320_v44 = vpop.eup %2761  ;;  %v852_v62 = vmul.f32 %v3368_v59, %v3366_v58 }
 0x1d3   : > { %2664 = vpush %v1521_v43  ;;  %v3324_v46 = vpop.eup %2763  ;;  %v661_v49 = vsel %vm259_vm1, %v3320_v44, 0.0  ;;  %v3432_v43 = vld [vmem:[#allocation2 + $0xf8] sm:$0x3] }
 0x1d4   : > { %647 = vadd.xlane.f32.xlu1 %v646_v45  ;;  %v655_v47 = vsel %vm259_vm1, %v3324_v46, 0.0  ;;  %v1525_v1 = vpop.permute.xlu0 %1524 }
 0x1d5   : > { %656 = vadd.xlane.f32.xlu0 %v655_v47  ;;  %v3436_v47 = vld [vmem:[#allocation2 + $0x68] sm:$0xff] }
 0x1d7   : > { %v3328_v48 = vpop.eup %2765 }
 0x1d8   : > { %662 = vadd.xlane.f32.xlu1 %v661_v49  ;;  %v652_v50 = vsel %vm259_vm1, %v3328_v48, 0.0 }
 0x1d9   : > { %653 = vadd.xlane.f32.xlu0 %v652_v50  ;;  %v752_v50 = vld [vmem:[#allocation2 + $0xf0] sm:$0x3] }
 0x1ef   : > { %874 = vrot.lane.b32.xlu0 %v846_v52, %s4479_s8 }
 0x1f3   : > { %878 = vrot.lane.b32.xlu0 %v848_v55, %s4479_s8 }
 0x1f7   : > { %882 = vrot.lane.b32.xlu0 %v850_v57, %s4479_s8 }
 0x1f8   : > { %v612_v61 = vpop.xlane.xlu1 %611 }
 0x1f9   : > { %v622_v3 = vsub.f32 %v3261_v2, %v612_v61  ;;  %v1645_v2 = vpop.permute.xlu0 %1644  ;;  %v3442_v61 = vld [vmem:[#allocation2 + $0x98] sm:$0xff] }
 0x1fb   : > { %v636_v5 = vmul.f32 1.442695, %v622_v3  ;;  %886 = vrot.lane.b32.xlu0 %v852_v62, %s4479_s8 }
 0x1fc   : > { %v1523_v7 = vpop.permute.xlu1 %1522 }
 0x1fd   : > { %2767 = vpow2.f32 %v636_v5  ;;  %2666 = vpush %v1523_v7  ;;  %v1649_v31 = vpop.permute.xlu0 %1648 }
 0x1fe   : > { %s3389_s16 = spop %2652  ;;  %2668 = vpush %v1525_v1 }
 0x1ff   : > { %s3391_s10 = spop %2654  ;;  %970 = vrot.lane.b32.xlu0 %v946_v11, %s4551_s26  ;;  %v3447_v11 = vld [vmem:[#allocation2 + $0xe8] sm:$0xff] }
 0x200   : > { %s2657_s8 = spop %2656  ;;  %v1527_v12 = vpop.permute.xlu1 %1526 }
 0x201   : > { %v1372_v13 = vstv %s2657_s8  ;;  %s2659_s14 = spop %2658  ;;  %2670 = vpush %v1527_v12 }
 0x202   : > { %s2661_s13 = spop %2660  ;;  %2672 = vpush %v1645_v2  ;;  %v3409_v21 = vmul.f32 %v1372_v13, %v3405_v19  ;;  %v1375_v24 = vstv %s2659_s14  ;;  %v1383_v35 = vmul.f32 0.0, %v1372_v13  ;;  %v3423_v36 = vmul.f32 %v1372_v13, %v3278_v6  ;;  %s2910_s14 = smov [#allocation6]  }
 0x203   : > { %974 = vrot.lane.b32.xlu0 %v948_v15, %s4551_s26  ;;  %s2663_s8 = spop %2662  ;;  %v1378_v25 = vstv %s2661_s13  ;;  %v1386_v38 = vmul.f32 %v1372_v13, %v3257_v63  ;;  %v3426_v39 = vmul.f32 %v1372_v13, %v728_v20  ;;  %v1391_v49 = vmul.f32 0.0, %v1375_v24  ;;  %s4578_s13 = smov 127  }
 0x204   : > { %v1647_v23 = vpop.permute.xlu1 %1646  ;;  %v1381_v26 = vstv %s2663_s8  ;;  %4552 = vst [vmem:[#allocation14_spill] sm:$0xff] %v3423_v36  ;;  %v1394_v52 = vmul.f32 %v1375_v24, %v3428_v41  ;;  %v1400_v55 = vmul.f32 %v1378_v25, %v3430_v0  ;;  %v1392_v3 = vmul.f32 %v1375_v24, %v3436_v47 }
 0x205   : > { %2674 = vpush %v1647_v23  ;;  %v1406_v57 = vmul.f32 %v1381_v26, %v3432_v43  ;;  %v1393_v5 = vmul.f32 %v1375_v24, %v736_v32  ;;  %v1395_v7 = vmul.f32 0.0, %v1378_v25  ;;  %v3450_v2 = vmul.f32 %v1378_v25, %v3442_v61 }
 0x206   : > { %2676 = vpush %v1649_v31  ;;  %v1398_v12 = vmul.f32 %v1378_v25, %v3357_v56  ;;  %v1399_v13 = vmul.f32 %v1378_v25, %v744_v33  ;;  %v1403_v15 = vmul.f32 0.0, %v1381_v26  ;;  %v1404_v20 = vmul.f32 %v1381_v26, %v3447_v11 }
 0x207   : > { %v3434_v45 = vpop.eup %2767  ;;  %978 = vrot.lane.b32.xlu0 %v950_v22, %s4551_s26  ;;  %4554 = vst [vmem:[#allocation16_spill] sm:$0xff] %v3450_v2  ;;  %v1405_v22 = vmul.f32 %v1381_v26, %v752_v50  ;;  %v3454_v23 = vrot.slane %v1383_v35, 2  ;;  %v1440_v31 = vrot.slane %v3409_v21, 2  ;;  %v4484_v32 = vrot.slane %v3423_v36, 2 }
 0x208   : > { %4553 = vst [vmem:[#allocation15_spill] sm:$0xff] %v3434_v45  ;;  %v1651_v62 = vpop.permute.xlu1 %1650  ;;  %v658_v1 = vsel %vm259_vm1, %v3434_v45, 0.0  ;;  %v1450_v30 = vrot.slane %v1394_v52, 2  ;;  %v1460_v45 = vrot.slane %v1400_v55, 2  ;;  %v3462_v25 = vrot.slane %v1391_v49, 2 }
 0x209   : > { %659 = vadd.xlane.f32.xlu1 %v658_v1  ;;  %2678 = vpush %v1651_v62  ;;  %4555 = vst [vmem:[#allocation17_spill] sm:$0xff] %v3454_v23  ;;  %v1436_v62 = vrot.slane %v1386_v38, 2  ;;  %v3460_v1 = vmul.f32 %v1375_v24, %v3338_v51  ;;  %v1470_v33 = vrot.slane %v1406_v57, 2  ;;  %v1448_v50 = vrot.slane %v1393_v5, 2 }
 0x20a   : > { %4557 = vst [vmem:[#allocation19_spill] sm:$0xff] %v3462_v25  ;;  %v3470_v38 = vrot.slane %v1395_v7, 2  ;;  %v4486_v24 = vrot.slane %v3450_v2, 2  ;;  %v1456_v52 = vrot.slane %v1398_v12, 2  ;;  %v3475_v49 = vmul.f32 %v1381_v26, %v3366_v58 }
 0x20b   : > { %982 = vrot.lane.b32.xlu0 %v952_v27, %s4551_s26  ;;  %4556 = vst [vmem:[#allocation18_spill] sm:$0xff] %v3460_v1  ;;  %v3467_v35 = vsel %vm1431_vm4, %v4484_v32, %v1436_v62  ;;  %v1446_v27 = vrot.slane %v1392_v3, 2  ;;  %v3477_v55 = vrot.slane %v1403_v15, 2  ;;  %v3481_v57 = vsel %vm1431_vm4, %v3462_v25, %v1448_v50 }
 0x20c   : > { %4558 = vst [vmem:[#allocation20_spill] sm:$0xff] %v3467_v35  ;;  %4559 = vst [vmem:[#allocation21_spill] sm:$0xff] %v3470_v38  ;;  %v1466_v3 = vrot.slane %v1404_v20, 2  ;;  %v4564_v5 = vstv %s3362_s30  ;;  %v1163_v21 = vstv %s3370_s6  ;;  %v3495_v26 = vsel %vm1431_vm4, %v4486_v24, %v1456_v52 }
 0x20d   : > { %4560 = vst [vmem:[#allocation22_spill] sm:$0xff] %v3475_v49  ;;  %4561 = vst [vmem:[#allocation23_spill] sm:$0xff] %v3477_v55  ;;  %v3484_v32 = vsel %vm1431_vm4, %v1446_v27, %v1450_v30  ;;  %v3489_v7 = vmul.f32 %v4564_v5, %v3278_v6  ;;  %v1468_v12 = vrot.slane %v1405_v22, 2  ;;  %v1438_v30 = vrot.slane %v3426_v39, 2 }
 0x20e   : > { %4562 = vst [vmem:[#allocation24_spill] sm:$0xff] %v3481_v57  ;;  %4563 = vst [vmem:[#allocation25_spill] sm:$0xff] %v3484_v32  ;;  %v3499_v15 = vsel %vm1431_vm4, %v1466_v3, %v1470_v33  ;;  %v3503_v20 = vsel %vm1431_vm4, %v1436_v62, %v1440_v31  ;;  %v3510_v50 = vsel %vm1431_vm4, %v3462_v25, %v3462_v25  ;;  %v4569_v5 = vrot.slane %v3460_v1, 2  ;;  %v3740_v25 = vpop.permute.xlu0 %866 }
 0x20f   : > { %986 = vrot.lane.b32.xlu0 %v954_v28, %s4551_s26  ;;  %4565 = vst [vmem:[#allocation26_spill] sm:$0xff] %v3495_v26  ;;  %v4485_v28 = vrot.slane %v3475_v49, 2  ;;  %4566 = vst [vmem:[#allocation27_spill] sm:$0xff] %v3499_v15  ;;  %v1458_v33 = vrot.slane %v1399_v13, 2  ;;  %v3518_v39 = vsel %vm1431_vm4, %v1456_v52, %v1460_v45  ;;  %v3522_v31 = vsel %vm1431_vm4, %v3477_v55, %v1468_v12 }
 0x210   : > { %4567 = vst [vmem:[#allocation28_spill] sm:$0xff] %v3503_v20  ;;  %4568 = vst [vmem:[#allocation29_spill] sm:$0xff] %v3510_v50  ;;  %v3515_v22 = vsel %vm1431_vm4, %v4569_v5, %v1446_v27  ;;  %v3531_v62 = vsel %vm1431_vm4, %v3477_v55, %v3477_v55  ;;  %v4576_v45 = vstv %s3362_s30  ;;  %v4487_v52 = vrot.slane %v3489_v7, 1 }
 0x211   : > { %4570 = vst [vmem:[#allocation30_spill] sm:$0xff] %v3515_v22  ;;  %4571 = vst [vmem:[#allocation31_spill] sm:$0xff] %v3518_v39  ;;  %v3536_v13 = vsel %vm1431_vm4, %v4485_v28, %v1466_v3  ;;  %v3541_v27 = vmul.f32 %v4576_v45, %v3257_v63  ;;  %v3546_v12 = vsel %vm1431_vm4, %v3470_v38, %v1458_v33  ;;  %v1166_v24 = vstv %s3372_s0  ;;  %s2665_s0 = spop %2664 }
 0x212   : > { %4572 = vst [vmem:[#allocation32_spill] sm:$0xff] %v3522_v31  ;;  %4574 = vst [vmem:[#allocation34_spill] sm:$0xff] %v3531_v62  ;;  %v3552_v5 = vmul.f32 %v1163_v21, %v3436_v47  ;;  %v847_v3 = vmul.f32 %v3285_v9, %v3436_v47  ;;  %v3572_v9 = vmul.f32 %v1166_v24, %v3442_v61  ;;  %v1169_v15 = vstv %s3377_s1 }
 0x213   : > { %990 = vrot.lane.b32.xlu0 %v3419_v29, %s4551_s26  ;;  %v3526_v29 = vsel %vm1431_vm4, %v3454_v23, %v1438_v30  ;;  %4575 = vst [vmem:[#allocation35_spill] sm:$0xff] %v3536_v13  ;;  %4577 = vst [vmem:[#allocation36_spill] sm:$0xff] %v3546_v12  ;;  %v3549_v30 = vmul.f32 %v1163_v21, %v3338_v51  ;;  %v4488_v45 = vrot.slane %v3541_v27, 1  ;;  %v1268_v55 = vstv %s3382_s20 }
 0x214   : > { %4573 = vst [vmem:[#allocation33_spill] sm:$0xff] %v3526_v29  ;;  %v4490_v33 = vrot.slane %v3552_v5, 1  ;;  %v849_v21 = vmul.f32 %v3348_v54, %v3442_v61  ;;  %v4493_v31 = vrot.slane %v3572_v9, 1  ;;  %v3592_v49 = vmul.f32 %v1169_v15, %v3447_v11 }
 0x215   : > { %v4491_v28 = vrot.slane %v3549_v30, 1  ;;  %v1277_v32 = vstv %s3391_s10  ;;  %v3690_v57 = vstv %s2665_s0 }
 0x216   : > { %v4587_v62 = vrot.slane %v3592_v49, 1 }
 0x217   : > { %1199 = vrot.lane.b32.xlu0 %v4487_v52, %s4578_s13  ;;  %v3569_v52 = vld [vmem:[#allocation2 + $0xc8] sm:$0xff] }
 0x218   : > { %v851_v54 = vmul.f32 %v3368_v59, %v3569_v52 }
 0x21a   : > { %876 = vrot.lane.b32.xlu1 %v847_v3, %s4578_s13  ;;  %v1192_v3 = vsel %vm1078_vm5, %v4491_v28, %v4490_v33  ;;  %v4495_v28 = vrot.slane %v3592_v49, 1 }
 0x21b   : > { %1203 = vrot.lane.b32.xlu0 %v4488_v45, %s4578_s13  ;;  %v3585_v45 = vmul.f32 %v1166_v24, %v3357_v56 }
 0x21d   : > { %v4494_v24 = vrot.slane %v3585_v45, 1  ;;  %v4583_v1 = vrot.slane %v3585_v45, 1 }
 0x21e   : > { %880 = vrot.lane.b32.xlu1 %v849_v21, %s4578_s13  ;;  %v3589_v21 = vmul.f32 %v1169_v15, %v3366_v58  ;;  %v947_v15 = vmul.f32 %v3380_v4, %v3278_v6 }
 0x21f   : > { %1207 = vrot.lane.b32.xlu0 %v1192_v3, %s4578_s13  ;;  %v853_v3 = vmul.f32 %v3368_v59, %v3447_v11 }
 0x220   : > { %v4496_v33 = vrot.slane %v3589_v21, 1 }
 0x222   : > { %884 = vrot.lane.b32.xlu1 %v851_v54, %s4578_s13  ;;  %v3611_v54 = vmul.f32 %v1268_v55, %v3278_v6  ;;  %v1198_v59 = vsel %vm1078_vm5, %v4496_v33, %v4495_v28 }
 0x223   : > { %1211 = vrot.lane.b32.xlu0 %v4493_v31, %s4578_s13  ;;  %v949_v31 = vmul.f32 %v3397_v16, %v3283_v8  ;;  %v951_v8 = vmul.f32 %v3397_v16, %v3436_v47 }
 0x224   : > { %v4497_v4 = vrot.slane %v3611_v54, 1 }
 0x226   : > { %888 = vrot.lane.b32.xlu1 %v853_v3, %s4578_s13  ;;  %v1271_v3 = vstv %s3385_s9 }
 0x227   : > { %1215 = vrot.lane.b32.xlu0 %v4494_v24, %s4578_s13  ;;  %v3624_v24 = vmul.f32 %v1268_v55, %v3257_v63  ;;  %v3628_v26 = vmul.f32 %v1271_v3, %v3338_v51  ;;  %v1274_v55 = vstv %s3389_s16 }
 0x229   : > { %v4500_v28 = vrot.slane %v3628_v26, 1 }
 0x22a   : > { %972 = vrot.lane.b32.xlu1 %v947_v15, %s4551_s26  ;;  %v3631_v15 = vmul.f32 %v1271_v3, %v3436_v47  ;;  %v3645_v3 = vmul.f32 %v1274_v55, %v3442_v61 }
 0x22b   : > { %1219 = vrot.lane.b32.xlu0 %v1198_v59, %s4578_s13  ;;  %v4498_v59 = vrot.slane %v3624_v24, 1 }
 0x22c   : > { %v4499_v33 = vrot.slane %v3631_v15, 1 }
 0x22e   : > { %976 = vrot.lane.b32.xlu1 %v949_v31, %s4551_s26  ;;  %v953_v31 = vmul.f32 %v3400_v17, %v3442_v61  ;;  %v1300_v16 = vsel %vm1078_vm5, %v4500_v28, %v4499_v33  ;;  %v3667_v17 = vmul.f32 %v1277_v32, %v3366_v58  ;;  %s2667_s16 = spop %2666 }
 0x22f   : > { %1307 = vrot.lane.b32.xlu0 %v4497_v4, %s4551_s26  ;;  %v4501_v4 = vrot.slane %v3645_v3, 1  ;;  %s2669_s22 = spop %2668 }
 0x232   : > { %980 = vrot.lane.b32.xlu1 %v951_v8, %s4551_s26  ;;  %v3659_v8 = vmul.f32 %v1274_v55, %v3357_v56  ;;  %v957_v55 = vmul.f32 %v3403_v18, %v3447_v11  ;;  %s2671_s23 = spop %2670 }
 0x233   : > { %1311 = vrot.lane.b32.xlu0 %v4498_v59, %s4551_s26  ;;  %v955_v59 = vmul.f32 %v3403_v18, %v3569_v52  ;;  %s2673_s28 = spop %2672 }
 0x234   : > { %v4504_v33 = vrot.slane %v3659_v8, 1  ;;  %v3792_v12 = vstv %s2673_s28 }
 0x236   : > { %984 = vrot.lane.b32.xlu1 %v953_v31, %s4551_s26  ;;  %v3670_v31 = vmul.f32 %v1277_v32, %v3447_v11  ;;  %v4579_v32 = vrot.slane %v3541_v27, 1  ;;  %v2461_v27 = vld [vmem:[%s4471_s2] ss:$0 sm:$0xff]  ;;  %s2675_s6 = spop %2674 }
 0x237   : > { %1315 = vrot.lane.b32.xlu0 %v1300_v16, %s4551_s26  ;;  %v4503_v16 = vrot.slane %v3667_v17, 1  ;;  %s2677_s9 = spop %2676 }
 0x238   : > { %v4502_v28 = vrot.slane %v3670_v31, 1 }
 0x23a   : > { %988 = vrot.lane.b32.xlu1 %v955_v59, %s4551_s26  ;;  %v4580_v59 = vrot.slane %v3489_v7, 1  ;;  %v1306_v18 = vsel %vm1078_vm5, %v4503_v16, %v4502_v28  ;;  %v3704_v7 = vmul.f32 %v3690_v57, %v3278_v6  ;;  %v1532_v28 = vstv %s2667_s16  ;;  %s2822_s16 = sshll.u32 %s2910_s14, 4  ;;  %s2823_s16 = int_to_ptr.vmem [resolvable:$false] %s2822_s16 }
 0x23b   : > { %1319 = vrot.lane.b32.xlu0 %v4501_v4, %s4551_s26  ;;  %v4582_v16 = vrot.slane %v3552_v5, 1  ;;  %v4584_v5 = vrot.slane %v3572_v9, 1  ;;  %v3754_v9 = vpop.permute.xlu1 %868  ;;  %s2824_s20 = scalar_lea.vmem %s2823_s16, 2048 }
 0x23c   : > { %v1189_v4 = vsel %vm1078_vm5, %v4580_v59, %v4579_v32  ;;  %v4508_v32 = vrot.slane %v3704_v7, 2  ;;  %4585 = vst [vmem:[#allocation37_spill] sm:$0xff] %v3754_v9 }
 0x23e   : > { %992 = vrot.lane.b32.xlu1 %v957_v55, %s4551_s26  ;;  %v3708_v55 = vmul.f32 %v3690_v57, %v3257_v63 }
 0x23f   : > { %1323 = vrot.lane.b32.xlu0 %v4504_v33, %s4551_s26  ;;  %v3722_v33 = vmul.f32 %v1532_v28, %v3338_v51 }
 0x240   : > { %v4507_v59 = vrot.slane %v3708_v55, 2 }
 0x242   : > { %1201 = vrot.lane.b32.xlu1 %v1189_v4, %s4578_s13  ;;  %v4581_v4 = vrot.slane %v3549_v30, 1  ;;  %v3725_v30 = vmul.f32 %v1532_v28, %v3436_v47 }
 0x243   : > { %1327 = vrot.lane.b32.xlu0 %v1306_v18, %s4551_s26  ;;  %v2464_v18 = vld [vmem:[%s4471_s2 + $0x3] ss:$0 sm:$0xff] }
 0x244   : > { %v4510_v35 = vrot.slane %v3725_v30, 2 }
 0x246   : > { %1205 = vrot.lane.b32.xlu1 %v4581_v4, %s4578_s13  ;;  %v1566_v4 = vsel %vm1431_vm4, %v4508_v32, %v4507_v59  ;;  %v1538_v32 = vstv %s2671_s23 }
 0x247   : > { %1793 = vperm.xlu0 %2751, %v2461_v27   ;;  %v1545_v27 = vmul.f32 %v1532_v28, %v3428_v41  ;;  %v4509_v28 = vrot.slane %v3722_v33, 2 }
 0x249   : > { %v1572_v13 = vrot.slane %v1545_v27, 2  ;;  %v3762_v27 = vpop.permute.xlu0 %870 }
 0x24a   : > { %1209 = vrot.lane.b32.xlu1 %v4582_v16, %s4578_s13  ;;  %v1195_v16 = vsel %vm1078_vm5, %v4584_v5, %v4583_v1  ;;  %v4586_v5 = vrot.slane %v3589_v21, 1  ;;  %v3774_v21 = vmul.f32 %v1538_v32, %v3366_v58 }
 0x24b   : > { %1805 = vperm.xlu0 %2751, %v2464_v18   ;;  %v3738_v18 = vstv %s2669_s22  ;;  %v1573_v59 = vsel %vm1431_vm4, %v4510_v35, %v1572_v13 }
 0x24c   : > { %v3748_v45 = vmul.f32 %v3738_v18, %v3442_v61  ;;  %v3752_v1 = vmul.f32 %v3738_v18, %v3357_v56  ;;  %v4516_v2 = vrot.slane %v3774_v21, 2 }
 0x24e   : > { %1213 = vrot.lane.b32.xlu1 %v1195_v16, %s4578_s13  ;;  %v1551_v16 = vmul.f32 %v1538_v32, %v3432_v43  ;;  %v4589_v13 = vrot.slane %v3752_v1, 2  ;;  %v4590_v35 = vrot.slane %v3748_v45, 2 }
 0x24f   : > { %1586 = vrot.lane.b32.xlu0 %v1566_v4, %s4578_s13  ;;  %v3779_v4 = vmul.f32 %v1538_v32, %v3447_v11 }
 0x250   : > { %v1576_v49 = vsel %vm1431_vm4, %v4590_v35, %v4589_v13  ;;  %v1582_v38 = vrot.slane %v1551_v16, 2  ;;  %v3800_v35 = vmul.f32 %v3792_v12, %v3278_v6 }
 0x251   : > { %v4517_v32 = vrot.slane %v3779_v4, 2 }
 0x252   : > { %1217 = vrot.lane.b32.xlu1 %v4586_v5, %s4578_s13  ;;  %v3776_v5 = vpop.permute.xlu1 %872  ;;  %v4515_v13 = vrot.slane %v3800_v35, 2 }
 0x253   : > { %1590 = vrot.lane.b32.xlu0 %v4509_v28, %s4578_s13  ;;  %4588 = vst [vmem:[#allocation38_spill] sm:$0xff] %v3776_v5 }
 0x256   : > { %1221 = vrot.lane.b32.xlu1 %v4587_v62, %s4578_s13  ;;  %v4591_v62 = vrot.slane %v3624_v24, 1  ;;  %v3804_v24 = vmul.f32 %v3792_v12, %v3257_v63 }
 0x257   : > { %1594 = vrot.lane.b32.xlu0 %v1573_v59, %s4578_s13  ;;  %v4592_v59 = vrot.slane %v3611_v54, 1  ;;  %v1656_v54 = vstv %s2675_s6 }
 0x259   : > { %v645_v28 = vpop.xlane.xlu0 %644  ;;  %v1297_v39 = vsel %vm1078_vm5, %v4592_v59, %v4591_v62  ;;  %v4596_v62 = vrot.slane %v3645_v3, 1 }
 0x25a   : > { %1309 = vrot.lane.b32.xlu1 %v1297_v39, %s4551_s26  ;;  %2769 = vrcp.f32 %v645_v28  ;;  %v4593_v39 = vrot.slane %v3628_v26, 1  ;;  %v4594_v26 = vrot.slane %v3631_v15, 1 }
 0x25b   : > { %1598 = vrot.lane.b32.xlu0 %v1576_v49, %s4578_s13  ;;  %v4514_v49 = vrot.slane %v3804_v24, 2 }
 0x25d   : > { %v651_v22 = vpop.xlane.xlu1 %650  ;;  %v642_v50 = vpop.xlane.xlu0 %641  ;;  %v1690_v15 = vsel %vm1431_vm4, %v4515_v13, %v4514_v49 }
 0x25e   : > { %2771 = vrcp.f32 %v642_v50  ;;  %1313 = vrot.lane.b32.xlu1 %v4593_v39, %s4551_s26  ;;  %v1583_v50 = vsel %vm1431_vm4, %v4517_v32, %v1582_v38  ;;  %v3827_v39 = vmul.f32 %v1656_v54, %v3338_v51  ;;  %v3830_v38 = vmul.f32 %v1656_v54, %v3436_v47 }
 0x25f   : > { %1602 = vrot.lane.b32.xlu0 %v4516_v2, %s4578_s13  ;;  %2773 = vrcp.f32 %v651_v22  ;;  %v4595_v22 = vrot.slane %v3659_v8, 1  ;;  %v3841_v8 = vstv %s3242_s5  ;;  %s2679_s5 = spop %2678  ;;  %v3865_v2 = vstv %s3244_s7 }
 0x261   : > { %v648_v16 = vpop.xlane.xlu1 %647  ;;  %v1303_v59 = vsel %vm1078_vm5, %v4596_v62, %v4595_v22 }
 0x262   : > { %2775 = vrcp.f32 %v648_v16  ;;  %1317 = vrot.lane.b32.xlu1 %v4594_v26, %s4551_s26  ;;  %v657_v28 = vpop.xlane.xlu0 %656  ;;  %v1669_v16 = vmul.f32 %v1656_v54, %v3428_v41  ;;  %v4597_v54 = vrot.slane %v3667_v17, 1 }
 0x263   : > { %1606 = vrot.lane.b32.xlu0 %v1583_v50, %s4578_s13  ;;  %v3838_v50 = vstv %s2677_s9  ;;  %2777 = vrcp.f32 %v657_v28 }
 0x264   : > { %v2770_v26 = vpop.eup %2769  ;;  %v1696_v62 = vrot.slane %v1669_v16, 2  ;;  %v3849_v49 = vmul.f32 %v3838_v50, %v3442_v61  ;;  %v3853_v28 = vmul.f32 %v3838_v50, %v3357_v56 }
 0x265   : > { %v673_v32 = vmul.f32 %v2770_v26, %v3298_v34 }
 0x266   : > { %1321 = vrot.lane.b32.xlu1 %v1303_v59, %s4551_s26  ;;  %v654_v3 = vpop.xlane.xlu0 %653  ;;  %v3855_v59 = vld [vmem:[#allocation2] sm:$0xff]  ;;  %v4522_v34 = vrot.slane %v3849_v49, 2  ;;  %v4521_v17 = vrot.slane %v3853_v28, 2 }
 0x267   : > { %2779 = vrcp.f32 %v654_v3  ;;  %1710 = vrot.lane.b32.xlu0 %v1690_v15, %s4551_s26  ;;  %v3859_v3 = vmul.f32 %v3855_v59, %v3841_v8  ;;  %v783_v15 = vmul.f32 %v3841_v8, %v3338_v51 }
 0x268   : > { %v2772_v41 = vpop.eup %2771 }
 0x269   : > { %v672_v16 = vmul.f32 %v2772_v41, %v3306_v37  ;;  %v2774_v13 = vpop.eup %2773  ;;  %v4598_v37 = vrot.slane %v3827_v39, 2  ;;  %v1662_v41 = vstv %s2679_s5 }
 0x26a   : > { %1325 = vrot.lane.b32.xlu1 %v4597_v54, %s4551_s26  ;;  %v875_v22 = vpop.permute.xlu0 %874  ;;  %v4599_v54 = vrot.slane %v3830_v38, 2 }
 0x26b   : > { %v3872_v29 = vadd.f32 %v875_v22, %v3859_v3  ;;  %v3874_v36 = vadd.f32 %v875_v22, %v783_v15  ;;  %2544 = vmatprep.mubr.msk.f32.mxu0 %vm259_vm1, %v672_v16  ;;  %1714 = vrot.lane.b32.xlu0 %v4598_v37, %s4551_s26  ;;  %v675_v15 = vmul.f32 %v2774_v13, %v3308_v40 }
 0x26c   : > { %v2776_v20 = vpop.eup %2775  ;;  %2545 = vmatmul.mubr.msk.f32.vlgmr.msra.gmra.mrb[4].mxu0 %vm259_vm1, %v673_v32  ;;  %v1697_v22 = vsel %vm1431_vm4, %v4599_v54, %v1696_v62  ;;  %v3890_v16 = vmul.f32 %v3855_v59, %v3865_v2  ;;  %v787_v37 = vmul.f32 %v3865_v2, %v3346_v53  ;;  %v4600_v32 = vrot.slane %v3670_v31, 1 }
 0x26d   : > { %v674_v26 = vmul.f32 %v2776_v20, %v3315_v42  ;;  %2603 = vmatpush3.bf16.msra.mxu0 %v3117_v14  ;;  %v2462_v14 = vld [vmem:[%s4471_s2 + $0x1] ss:$0 sm:$0xff]  ;;  %v3910_v53 = vmul.f32 %v1662_v41, %v3366_v58  ;;  %v2778_v31 = vpop.eup %2777  ;;  %v3913_v13 = vmul.f32 %v1662_v41, %v3447_v11  ;;  %v1675_v62 = vmul.f32 %v1662_v41, %v3432_v43 }
 0x26e   : > { %1329 = vrot.lane.b32.xlu1 %v4600_v32, %s4551_s26  ;;  %v879_v42 = vpop.permute.xlu0 %878  ;;  %v677_v41 = vmul.f32 %v2778_v31, %v3324_v46  ;;  %v1542_v46 = vmul.f32 %v3690_v57, %v3405_v19 }
 0x26f   : > { %2551 = vmatprep.mubr.msk.f32.mxu1 %vm259_vm1, %v674_v26  ;;  %v3900_v40 = vadd.f32 %v879_v42, %v3890_v16  ;;  %v3902_v20 = vadd.f32 %v879_v42, %v787_v37  ;;  %1718 = vrot.lane.b32.xlu0 %v1697_v22, %s4551_s26  ;;  %4601 = vst [vmem:[#allocation39_spill] sm:$0xff] %v3910_v53  ;;  %4602 = vst [vmem:[#allocation40_spill] sm:$0xff] %v3913_v13  ;;  %v1035_v37 = vstv %s3342_s29 }
 0x270   : > { %2552 = vmatmul.mubr.msk.f32.vlgmr.msra.gmra.mrb[4].mxu1 %vm259_vm1, %v675_v15  ;;  %v1700_v26 = vsel %vm1431_vm4, %v4522_v34, %v4521_v17  ;;  %v791_v22 = vmul.f32 %v3865_v2, %v3357_v56  ;;  %v3925_v15 = vstv %s3248_s19  ;;  %v4527_v42 = vrot.slane %v3910_v53, 2  ;;  %s2479_s19 = sshll.u32 %s2892_s15, 10  ;;  %s2303_s15 = scalar_lea.sflag [#allocation5], %s3045_s11 }
 0x271   : > { %2607 = vmatpush3.bf16.msra.mxu1 %v3104_v10  ;;  %v2780_v54 = vpop.eup %2779  ;;  %v2463_v10 = vld [vmem:[%s4471_s2 + $0x2] ss:$0 sm:$0xff]  ;;  %v3941_v34 = vstv %s3235_s4  ;;  %v3950_v31 = vmul.f32 %v3855_v59, %v3925_v15 }
 0x272   : > { %1797 = vperm.xlu1 %2752, %v2462_v14   ;;  %v883_v32 = vpop.permute.xlu0 %882  ;;  %v676_v43 = vmul.f32 %v2780_v54, %v3328_v48  ;;  %v4529_v14 = vrot.slane %v3913_v13, 2  ;;  %v1706_v48 = vrot.slane %v1675_v62, 2  ;;  %v1046_v54 = vmul.f32 %v3855_v59, %v1035_v37 }
 0x273   : > { %v3932_v23 = vadd.f32 %v883_v32, %v3890_v16  ;;  %v3934_v17 = vadd.f32 %v883_v32, %v791_v22  ;;  %1722 = vrot.lane.b32.xlu0 %v1700_v26, %s4551_s26  ;;  %4603 = vst [vmem:[#allocation41_spill] sm:$0xff] %v3950_v31  ;;  %v795_v26 = vmul.f32 %v3925_v15, %v3366_v58 }
 0x274   : > { %2558 = vmatprep.mubr.msk.f32.mxu0 %vm259_vm1, %v676_v43  ;;  %v3956_v22 = vmul.f32 %v1035_v37, %v3278_v6  ;;  %v3960_v32 = vmul.f32 %v3855_v59, %v3941_v34  ;;  %v775_v57 = vmul.f32 %v3941_v34, %v3252_v60  ;;  %v1707_v6 = vsel %vm1431_vm4, %v4529_v14, %v1706_v48 }
 0x275   : > { %2559 = vmatmul.mubr.msk.f32.vlgmr.msra.gmra.mrb[6].mxu0 %vm259_vm1, %v677_v41  ;;  %v1567_v60 = vrot.slane %v1542_v46, 2  ;;  %v779_v48 = vmul.f32 %v3941_v34, %v3257_v63 }
 0x276   : > { %1801 = vperm.xlu1 %2752, %v2463_v10   ;;  %v887_v62 = vpop.permute.xlu0 %886  ;;  %v1038_v10 = vstv %s3350_s21  ;;  %v902_v5 = vadd.f32 %v3740_v25, %v3960_v32  ;;  %v903_v9 = vadd.f32 %v3740_v25, %v775_v57  ;;  %v4531_v53 = vrot.slane %v3956_v22, 1 }
 0x277   : > { %v3965_v43 = vadd.f32 %v887_v62, %v3950_v31  ;;  %v3967_v41 = vadd.f32 %v887_v62, %v795_v26  ;;  %1726 = vrot.lane.b32.xlu0 %v4527_v42, %s4551_s26  ;;  %v3980_v31 = vmul.f32 %v1035_v37, %v3257_v63  ;;  %v3982_v26 = vrot.slane %v1046_v54, 1 }
 0x278   : > { %v4604_v62 = vrot.slane %v3704_v7, 2  ;;  %v1050_v25 = vmul.f32 %v3855_v59, %v1038_v10  ;;  %v3993_v37 = vmul.f32 %v1038_v10, %v3338_v51  ;;  %v3996_v46 = vmul.f32 %v1038_v10, %v3436_v47 }
 0x279   : > { %v906_v7 = vadd.f32 %v3762_v27, %v3960_v32  ;;  %v907_v54 = vadd.f32 %v3762_v27, %v779_v48  ;;  %v4605_v63 = vrot.slane %v3708_v55, 2  ;;  %v4532_v57 = vrot.slane %v3980_v31, 1 }
 0x27a   : > { %1584 = vrot.lane.b32.xlu1 %v4604_v62, %s4578_s13  ;;  %v971_v42 = vpop.permute.xlu0 %970  ;;  %v4009_v62 = vrot.slane %v1050_v25, 1  ;;  %v1086_v27 = vrot.slane %v3993_v37, 1  ;;  %v4533_v55 = vrot.slane %v3996_v46, 1  ;;  %v4607_v48 = vrot.slane %v3722_v33, 2 }
 0x27b   : > { %v1006_v14 = vadd.f32 %v971_v42, %v902_v5  ;;  %v1007_v13 = vadd.f32 %v971_v42, %v903_v9  ;;  %1730 = vrot.lane.b32.xlu0 %v1707_v6, %s4551_s26  ;;  %v1568_v9 = vsel %vm1431_vm4, %v4605_v63, %v1567_v60  ;;  %v1041_v60 = vstv %s3353_s24 }
 0x27c   : > { %v1090_v33 = vsel %vm1078_vm5, %v1086_v27, %v4533_v55  ;;  %v4633_v37 = vrot.slane %v3996_v46, 1 }
 0x27d   : > { %v1127_v5 = vadd.f32 %v3982_v26, %v1006_v14  ;;  %v1128_v42 = vadd.f32 %v4531_v53, %v1007_v13  ;;  %v1548_v14 = vmul.f32 %v3738_v18, %v3430_v0  ;;  %v4606_v13 = vrot.slane %v3725_v30, 2 }
 0x27e   : > { %1588 = vrot.lane.b32.xlu1 %v1568_v9, %s4578_s13  ;;  %v975_v51 = vpop.permute.xlu0 %974  ;;  %v1054_v9 = vmul.f32 %v3855_v59, %v1041_v60  ;;  %v4608_v53 = vrot.slane %v3748_v45, 2  ;;  %v4609_v45 = vrot.slane %v3752_v1, 2 }
 0x27f   : > { %v1010_v6 = vadd.f32 %v975_v51, %v906_v7  ;;  %v1011_v10 = vadd.f32 %v975_v51, %v907_v54  ;;  %v1571_v63 = vsel %vm1431_vm4, %v4607_v48, %v4606_v13  ;;  %v4027_v51 = vmul.f32 %v1041_v60, %v3442_v61 }
 0x281   : > { %v1131_v7 = vadd.f32 %v3982_v26, %v1010_v6  ;;  %v1132_v25 = vadd.f32 %v4532_v57, %v1011_v10  ;;  %v1044_v6 = vstv %s3359_s18  ;;  %v1577_v10 = vrot.slane %v1548_v14, 2  ;;  %s4655_s18 = sshll.u32 %s3045_s11, 6 }
 0x282   : > { %1592 = vrot.lane.b32.xlu1 %v1571_v63, %s4578_s13  ;;  %v979_v54 = vpop.permute.xlu0 %978  ;;  %v4039_v63 = vmul.f32 %v1041_v60, %v3357_v56  ;;  %v1058_v14 = vmul.f32 %v3855_v59, %v1044_v6  ;;  %v4054_v56 = vmul.f32 %v1044_v6, %v3447_v11  ;;  %s4388_s4 = scalar_lea.vmem [#allocation6], %s4655_s18 }
 0x283   : > { %v1014_v18 = vadd.f32 %v979_v54, %v3872_v29  ;;  %v1015_v30 = vadd.f32 %v979_v54, %v3874_v36  ;;  %v4044_v36 = vrot.slane %v1054_v9, 1  ;;  %v1092_v54 = vrot.slane %v4027_v51, 1  ;;  %s2319_s29 = sshll.u32 %s4388_s4, 4  ;;  %s4418_s29 = int_to_ptr.vmem [resolvable:$true] %s2319_s29 }
 0x284   : > { %v1095_v59 = vrot.slane %v4039_v63, 1  ;;  %s2818_s1 = scalar_lea.vmem %s4418_s29, 1024  ;;  %p2825_p6 = scmp.lt.s32.totalorder %s4418_s29, %s2823_s16 }
 0x285   : > { %v1135_v13 = vadd.f32 %v4009_v62, %v1014_v18  ;;  %v1136_v48 = vadd.f32 %v1090_v33, %v1015_v30  ;;  %v4051_v18 = vmul.f32 %v1044_v6, %v3366_v58  ;;  %v4066_v30 = vrot.slane %v1058_v14, 1  ;;  %p2819_p8 = scmp.ne.s32.totalorder %s4418_s29, %s2818_s1  ;;  %p2826_p13 = scmp.lt.s32.totalorder %s2824_s20, %s2818_s1 }
 0x286   : > { %1596 = vrot.lane.b32.xlu1 %v4608_v53, %s4578_s13  ;;  %v983_v29 = vpop.permute.xlu0 %982  ;;  %v1578_v53 = vsel %vm1431_vm4, %v4609_v45, %v1577_v10  ;;  %v1101_v33 = vrot.slane %v4054_v56, 1  ;;  %v4611_v6 = vrot.slane %v3774_v21, 2  ;;  %v1096_v46 = vsel %vm1078_vm5, %v1092_v54, %v1095_v59 }
 0x287   : > { %v1018_v57 = vadd.f32 %v983_v29, %v3900_v40  ;;  %v1019_v55 = vadd.f32 %v983_v29, %v3902_v20  ;;  %v1098_v1 = vrot.slane %v4051_v18, 1  ;;  %p2820_p11 = pnand %p2819_p8, %p4656_p9  ;;  %p2827_p2 = por %p2826_p13, %p2825_p6 }
 0x289   : > { %v1139_v60 = vadd.f32 %v4044_v36, %v1018_v57  ;;  %v1140_v9 = vadd.f32 %v1092_v54, %v1019_v55  ;;  %v1666_v57 = vmul.f32 %v3792_v12, %v3405_v19  ;;  %v4610_v55 = vrot.slane %v3779_v4, 2  ;;  %p2821_p0 = pneg %p2820_p11 }
 0x28a   : > { %1600 = vrot.lane.b32.xlu1 %v1578_v53, %s4578_s13  ;;  %v987_v40 = vpop.permute.xlu0 %986  ;;  %v1102_v19 = vsel %vm1078_vm5, %v1098_v1, %v1101_v33  ;;  %v663_v53 = vpop.xlane.xlu1 %662 }
 0x28b   : > { %v1022_v58 = vadd.f32 %v987_v40, %v3932_v23  ;;  %v1023_v20 = vadd.f32 %v987_v40, %v3934_v17  ;;  %v1581_v10 = vsel %vm1431_vm4, %v4611_v6, %v4610_v55  ;;  %v1691_v12 = vrot.slane %v1666_v57, 2  ;;  %p2828_p5 = pnand %p2827_p2, %p2821_p0 }
 0x28c   : > { %v4612_v40 = vrot.slane %v3800_v35, 2  ;;  %2781 = vrcp.f32 %v663_v53  ;;  %v1672_v35 = vmul.f32 %v3838_v50, %v3430_v0  ;;  %v4616_v50 = vrot.slane %v3849_v49, 2 }
 0x28d   : > { %v1143_v29 = vadd.f32 %v4044_v36, %v1022_v58  ;;  %v1144_v23 = vadd.f32 %v1095_v59, %v1023_v20 }
 0x28e   : > { %1604 = vrot.lane.b32.xlu1 %v1581_v10, %s4578_s13  ;;  %v991_v17 = vpop.permute.xlu0 %990  ;;  %s4416_s13 = scalar_lea.hbm %s4472_s3, %s2479_s19 }
 0x28f   : > { %v1026_v14 = vadd.f32 %v991_v17, %v3965_v43  ;;  %v1027_v45 = vadd.f32 %v991_v17, %v3967_v41  ;;  %v4613_v41 = vrot.slane %v3804_v24, 2  ;;  %v4615_v24 = vrot.slane %v3827_v39, 2 }
 0x291   : > { %v1147_v4 = vadd.f32 %v4066_v30, %v1026_v14  ;;  %v1148_v21 = vadd.f32 %v1102_v19, %v1027_v45  ;;  %v1692_v55 = vsel %vm1431_vm4, %v4613_v41, %v1691_v12 }
 0x292   : > { %1708 = vrot.lane.b32.xlu1 %v4612_v40, %s4551_s26  ;;  %v1200_v58 = vpop.permute.xlu0 %1199 }
 0x293   : > { %v4092_v20 = vadd.f32 %v1200_v58, %v1127_v5  ;;  %v4094_v43 = vadd.f32 %v1200_v58, %v1128_v42  ;;  %v785_v5 = vmul.f32 %v3841_v8, %v3436_v47  ;;  %v4614_v42 = vrot.slane %v3830_v38, 2 }
 0x294   : > { %v1701_v47 = vrot.slane %v1672_v35, 2  ;;  %v789_v38 = vmul.f32 %v3865_v2, %v3442_v61  ;;  %v793_v61 = vmul.f32 %v3925_v15, %v3569_v52  ;;  %v4617_v2 = vrot.slane %v3853_v28, 2  ;;  %v4618_v35 = vld [vmem:[#allocation15_spill] sm:$0xff]  ;;  %v4620_v28 = vld [vmem:[#allocation40_spill] sm:$0xff] }
 0x295   : > { %v1695_v14 = vsel %vm1431_vm4, %v4615_v24, %v4614_v42 }
 0x296   : > { %v660_v6 = vpop.xlane.xlu1 %659  ;;  %1712 = vrot.lane.b32.xlu1 %v1692_v55, %s4551_s26  ;;  %v1204_v57 = vpop.permute.xlu0 %1203  ;;  %v1702_v49 = vsel %vm1431_vm4, %v4617_v2, %v1701_v47  ;;  %v2787_v2 = vld [vmem:[#allocation2 + $0x48] sm:$0xff] }
 0x297   : > { %2783 = vrcp.f32 %v660_v6  ;;  %v4100_v10 = vadd.f32 %v1204_v57, %v1131_v7  ;;  %v4102_v17 = vadd.f32 %v1204_v57, %v1132_v25  ;;  %v2782_v40 = vpop.eup %2781 }
 0x298   : > { %v679_v6 = vmul.f32 %v2782_v40, %v3320_v44  ;;  %v797_v44 = vmul.f32 %v3925_v15, %v3447_v11  ;;  %v4624_v15 = vld [vmem:[#allocation37_spill] sm:$0xff] }
 0x29a   : > { %v877_v45 = vpop.permute.xlu1 %876  ;;  %1716 = vrot.lane.b32.xlu1 %v1695_v14, %s4551_s26  ;;  %v1208_v19 = vpop.permute.xlu0 %1207  ;;  %v4621_v14 = vrot.slane %v4620_v28, 2 }
 0x29b   : > { %v4115_v7 = vadd.f32 %v877_v45, %v3859_v3  ;;  %v4117_v25 = vadd.f32 %v877_v45, %v785_v5  ;;  %v4119_v12 = vadd.f32 %v1208_v19, %v1135_v13  ;;  %v4121_v0 = vadd.f32 %v1208_v19, %v1136_v48  ;;  %v4622_v45 = vld [vmem:[#allocation39_spill] sm:$0xff] }
 0x29c   : > { %v4623_v19 = vrot.slane %v4622_v45, 2  ;;  %v4628_v45 = vld [vmem:[#allocation17_spill] sm:$0xff] }
 0x29e   : > { %v881_v39 = vpop.permute.xlu1 %880  ;;  %1720 = vrot.lane.b32.xlu1 %v4616_v50, %s4551_s26  ;;  %v1212_v53 = vpop.permute.xlu0 %1211  ;;  %v1705_v47 = vsel %vm1431_vm4, %v4623_v19, %v4621_v14 }
 0x29f   : > { %v4129_v58 = vadd.f32 %v881_v39, %v3890_v16  ;;  %v4131_v41 = vadd.f32 %v881_v39, %v789_v38  ;;  %v4133_v13 = vadd.f32 %v1212_v53, %v1139_v60  ;;  %v4135_v48 = vadd.f32 %v1212_v53, %v1140_v9  ;;  %v4619_v60 = vld [vmem:[#allocation41_spill] sm:$0xff] }
 0x2a0   : > { %v2786_v38 = vld [vmem:[#allocation2 + $0x18] sm:$0xff] }
 0x2a1   : > { %v2784_v55 = vpop.eup %2783  ;;  %v777_v39 = vmul.f32 %v2786_v38, %v3941_v34  ;;  %v781_v34 = vmul.f32 %v2787_v2, %v3841_v8 }
 0x2a2   : > { %v885_v57 = vpop.permute.xlu1 %884  ;;  %1724 = vrot.lane.b32.xlu1 %v1702_v49, %s4551_s26  ;;  %v1216_v16 = vpop.permute.xlu0 %1215  ;;  %v678_v5 = vmul.f32 %v2784_v55, %v4618_v35  ;;  %v904_v55 = vadd.f32 %v4624_v15, %v3960_v32  ;;  %v4626_v32 = vrot.slane %v3980_v31, 1 }
 0x2a3   : > { %v4146_v42 = vadd.f32 %v885_v57, %v4619_v60  ;;  %v4148_v9 = vadd.f32 %v885_v57, %v793_v61  ;;  %v4150_v24 = vadd.f32 %v1216_v16, %v1143_v29  ;;  %v4152_v52 = vadd.f32 %v1216_v16, %v1144_v23 }
 0x2a4   : > { %2565 = vmatprep.mubr.msk.f32.mxu1 %vm259_vm1, %v678_v5  ;;  %v905_v61 = vadd.f32 %v4624_v15, %v777_v39  ;;  %v4631_v15 = vld [vmem:[#allocation33_spill] sm:$0xff] }
 0x2a5   : > { %2566 = vmatmul.mubr.msk.f32.vlgmr.msra.gmra.mrb[6].mxu1 %vm259_vm1, %v679_v6 }
 0x2a6   : > { %v889_v29 = vpop.permute.xlu1 %888  ;;  %1728 = vrot.lane.b32.xlu1 %v1705_v47, %s4551_s26  ;;  %v1220_v23 = vpop.permute.xlu0 %1219  ;;  %s2909_s26 = smov 1  }
 0x2a7   : > { %v4166_v50 = vadd.f32 %v889_v29, %v4619_v60  ;;  %v4168_v53 = vadd.f32 %v889_v29, %v797_v44  ;;  %v4170_v40 = vadd.f32 %v1220_v23, %v1147_v4  ;;  %v4172_v11 = vadd.f32 %v1220_v23, %v1148_v21  ;;  %v4625_v4 = vld [vmem:[#allocation38_spill] sm:$0xff] }
 0x2a8   : > { %v908_v21 = vadd.f32 %v4625_v4, %v3859_v3  ;;  %v909_v60 = vadd.f32 %v4625_v4, %v781_v34  ;;  %v4627_v44 = vrot.slane %v3956_v22, 1  ;;  %v4635_v4 = vld [vmem:[#allocation30_spill] sm:$0xff] }
 0x2aa   : > { %v973_v49 = vpop.permute.xlu1 %972  ;;  %v1308_v6 = vpop.permute.xlu0 %1307  ;;  %v1084_v28 = vsel %vm1078_vm5, %v4627_v44, %v4626_v32 }
 0x2ab   : > { %v1008_v57 = vadd.f32 %v973_v49, %v904_v55  ;;  %v1009_v16 = vadd.f32 %v973_v49, %v905_v61  ;;  %v1343_v35 = vadd.f32 %v1308_v6, %v4092_v20  ;;  %v1344_v5 = vadd.f32 %v1308_v6, %v4094_v43  ;;  %v4629_v20 = vld [vmem:[#allocation14_spill] sm:$0xff]  ;;  %v4632_v61 = vld [vmem:[#allocation28_spill] sm:$0xff] }
 0x2ac   : > { %v4630_v47 = vrot.slane %v4629_v20, 2 }
 0x2ad   : > { %v1129_v8 = vadd.f32 %v3982_v26, %v1008_v57  ;;  %v1130_v14 = vadd.f32 %v1084_v28, %v1009_v16  ;;  %v4190_v19 = vadd.f32 %v4628_v45, %v1343_v35  ;;  %v4634_v35 = vld [vmem:[#allocation29_spill] sm:$0xff] }
 0x2ae   : > { %v4194_v43 = vadd.f32 %v4630_v47, %v1344_v5  ;;  %v977_v38 = vpop.permute.xlu1 %976  ;;  %v1312_v3 = vpop.permute.xlu0 %1311  ;;  %v4636_v28 = vld [vmem:[#allocation21_spill] sm:$0xff]  ;;  %v4637_v47 = vld [vmem:[#allocation16_spill] sm:$0xff] }
 0x2af   : > { %v1012_v39 = vadd.f32 %v977_v38, %v908_v21  ;;  %v1013_v29 = vadd.f32 %v977_v38, %v909_v60  ;;  %v1347_v31 = vadd.f32 %v1312_v3, %v4100_v10  ;;  %v1348_v22 = vadd.f32 %v1312_v3, %v4102_v17  ;;  %v4639_v3 = vld [vmem:[#allocation36_spill] sm:$0xff] }
 0x2b1   : > { %v1133_v23 = vadd.f32 %v4009_v62, %v1012_v39  ;;  %v1134_v26 = vadd.f32 %v1086_v27, %v1013_v29  ;;  %v4202_v55 = vadd.f32 %v4631_v15, %v1347_v31  ;;  %v4205_v2 = vadd.f32 %v4632_v61, %v1348_v22  ;;  %v4640_v29 = vld [vmem:[#allocation31_spill] sm:$0xff] }
 0x2b2   : > { %v981_v34 = vpop.permute.xlu1 %980  ;;  %v1316_v49 = vpop.permute.xlu0 %1315 }
 0x2b3   : > { %v1016_v6 = vadd.f32 %v981_v34, %v4115_v7  ;;  %v1017_v57 = vadd.f32 %v981_v34, %v4117_v25  ;;  %v1351_v10 = vadd.f32 %v1316_v49, %v4119_v12  ;;  %v1352_v17 = vadd.f32 %v1316_v49, %v4121_v0  ;;  %v4642_v49 = vld [vmem:[#allocation35_spill] sm:$0xff] }
 0x2b5   : > { %v1137_v16 = vadd.f32 %v4009_v62, %v1016_v6  ;;  %v1138_v27 = vadd.f32 %v4633_v37, %v1017_v57  ;;  %v4215_v5 = vadd.f32 %v4634_v35, %v1351_v10  ;;  %v4218_v21 = vadd.f32 %v4635_v4, %v1352_v17 }
 0x2b6   : > { %v985_v60 = vpop.permute.xlu1 %984  ;;  %v1320_v32 = vpop.permute.xlu0 %1319 }
 0x2b7   : > { %v1020_v7 = vadd.f32 %v985_v60, %v4129_v58  ;;  %v1021_v25 = vadd.f32 %v985_v60, %v4131_v41  ;;  %v1355_v12 = vadd.f32 %v1320_v32, %v4133_v13  ;;  %v1356_v0 = vadd.f32 %v1320_v32, %v4135_v48 }
 0x2b8   : > { %v4638_v58 = vrot.slane %v4637_v47, 2 }
 0x2b9   : > { %v1141_v62 = vadd.f32 %v4044_v36, %v1020_v7  ;;  %v1142_v44 = vadd.f32 %v1096_v46, %v1021_v25  ;;  %v4231_v20 = vadd.f32 %v4636_v28, %v1355_v12 }
 0x2ba   : > { %v4235_v38 = vadd.f32 %v4638_v58, %v1356_v0  ;;  %v989_v41 = vpop.permute.xlu1 %988  ;;  %v1324_v13 = vpop.permute.xlu0 %1323 }
 0x2bb   : > { %v1024_v48 = vadd.f32 %v989_v41, %v4146_v42  ;;  %v1025_v63 = vadd.f32 %v989_v41, %v4148_v9  ;;  %v1359_v51 = vadd.f32 %v1324_v13, %v4150_v24  ;;  %v1360_v54 = vadd.f32 %v1324_v13, %v4152_v52  ;;  %v4644_v13 = vld [vmem:[#allocation19_spill] sm:$0xff] }
 0x2bd   : > { %v1145_v36 = vadd.f32 %v4066_v30, %v1024_v48  ;;  %v1146_v59 = vadd.f32 %v1098_v1, %v1025_v63  ;;  %v4245_v39 = vadd.f32 %v4639_v3, %v1359_v51  ;;  %v4248_v31 = vadd.f32 %v4640_v29, %v1360_v54  ;;  %v4641_v1 = vld [vmem:[#allocation34_spill] sm:$0xff] }
 0x2be   : > { %v993_v22 = vpop.permute.xlu1 %992  ;;  %v1328_v15 = vpop.permute.xlu0 %1327  ;;  %v4645_v63 = vld [vmem:[#allocation18_spill] sm:$0xff] }
 0x2bf   : > { %v1028_v42 = vadd.f32 %v993_v22, %v4166_v50  ;;  %v1029_v9 = vadd.f32 %v993_v22, %v4168_v53  ;;  %v1363_v24 = vadd.f32 %v1328_v15, %v4170_v40  ;;  %v1364_v52 = vadd.f32 %v1328_v15, %v4172_v11  ;;  %v4647_v22 = vld [vmem:[#allocation24_spill] sm:$0xff] }
 0x2c0   : > { %v4646_v51 = vrot.slane %v4645_v63, 2 }
 0x2c1   : > { %v1149_v61 = vadd.f32 %v4066_v30, %v1028_v42  ;;  %v1150_v18 = vadd.f32 %v1101_v33, %v1029_v9  ;;  %v4258_v34 = vadd.f32 %v4641_v1, %v1363_v24  ;;  %v4261_v6 = vadd.f32 %v4642_v49, %v1364_v52  ;;  %v4648_v42 = vld [vmem:[#allocation25_spill] sm:$0xff]  ;;  %v4649_v1 = vld [vmem:[#allocation26_spill] sm:$0xff] }
 0x2c2   : > { %v1202_v57 = vpop.permute.xlu1 %1201 }
 0x2c3   : > { %v1237_v10 = vadd.f32 %v1202_v57, %v1129_v8  ;;  %v1238_v50 = vadd.f32 %v1202_v57, %v1130_v14 }
 0x2c6   : > { %v1206_v17 = vpop.permute.xlu1 %1205  ;;  %v4263_v35 = vpop.permute.xlu0 %1793 }
 0x2c7   : > { %v1241_v53 = vadd.f32 %v1206_v17, %v1133_v23  ;;  %v1242_v37 = vadd.f32 %v1206_v17, %v1134_v26  ;;  %v4650_v17 = vld [vmem:[#allocation23_spill] sm:$0xff] }
 0x2ca   : > { %v1210_v40 = vpop.permute.xlu1 %1209  ;;  %v4265_v60 = vpop.permute.xlu0 %1805 }
 0x2cb   : > { %v1245_v11 = vadd.f32 %v1210_v40, %v1137_v16  ;;  %v1246_v30 = vadd.f32 %v1210_v40, %v1138_v27  ;;  %v4643_v16 = vld [vmem:[#allocation20_spill] sm:$0xff] }
 0x2ce   : > { %v1214_v4 = vpop.permute.xlu1 %1213  ;;  %v1587_v0 = vpop.permute.xlu0 %1586 }
 0x2cf   : > { %v1249_v56 = vadd.f32 %v1214_v4, %v1141_v62  ;;  %v1250_v33 = vadd.f32 %v1214_v4, %v1142_v44 }
 0x2d2   : > { %v1218_v32 = vpop.permute.xlu1 %1217  ;;  %v1591_v47 = vpop.permute.xlu0 %1590 }
 0x2d3   : > { %v1253_v7 = vadd.f32 %v1218_v32, %v1145_v36  ;;  %v1254_v25 = vadd.f32 %v1218_v32, %v1146_v59 }
 0x2d6   : > { %v1222_v12 = vpop.permute.xlu1 %1221  ;;  %v1595_v59 = vpop.permute.xlu0 %1594 }
 0x2d7   : > { %v1257_v8 = vadd.f32 %v1222_v12, %v1149_v61  ;;  %v1258_v14 = vadd.f32 %v1222_v12, %v1150_v18 }
 0x2da   : > { %v1310_v46 = vpop.permute.xlu1 %1309  ;;  %v1599_v61 = vpop.permute.xlu0 %1598 }
 0x2db   : > { %v1345_v23 = vadd.f32 %v1310_v46, %v1237_v10  ;;  %v1346_v26 = vadd.f32 %v1310_v46, %v1238_v50  ;;  %v4653_v46 = vld [vmem:[#allocation32_spill] sm:$0xff] }
 0x2dd   : > { %v1498_v58 = vadd.f32 %v4628_v45, %v1345_v23  ;;  %v1499_v27 = vadd.f32 %v4643_v16, %v1346_v26 }
 0x2de   : > { %v1314_v41 = vpop.permute.xlu1 %1313  ;;  %v1603_v4 = vpop.permute.xlu0 %1602 }
 0x2df   : > { %v1349_v62 = vadd.f32 %v1314_v41, %v1241_v53  ;;  %v1350_v44 = vadd.f32 %v1314_v41, %v1242_v37  ;;  %v4651_v37 = vld [vmem:[#allocation22_spill] sm:$0xff]  ;;  %v1623_v63 = vadd.f32 %v1587_v0, %v1499_v27 }
 0x2e0   : > { %v4652_v40 = vrot.slane %v4651_v37, 2 }
 0x2e1   : > { %v1502_v48 = vadd.f32 %v4644_v13, %v1349_v62  ;;  %v1503_v54 = vadd.f32 %v4646_v51, %v1350_v44  ;;  %v1622_v13 = vadd.f32 %v1587_v0, %v1498_v58 }
 0x2e2   : > { %v1318_v36 = vpop.permute.xlu1 %1317 }
 0x2e3   : > { %v1353_v3 = vadd.f32 %v1318_v36, %v1245_v11  ;;  %v1354_v29 = vadd.f32 %v1318_v36, %v1246_v30 }
 0x2e5   : > { %v1506_v15 = vadd.f32 %v4647_v22, %v1353_v3  ;;  %v1507_v9 = vadd.f32 %v4648_v42, %v1354_v29  ;;  %v1626_v42 = vadd.f32 %v1591_v47, %v1502_v48 }
 0x2e6   : > { %v1322_v24 = vpop.permute.xlu1 %1321 }
 0x2e7   : > { %v1357_v45 = vadd.f32 %v1322_v24, %v1249_v56  ;;  %v1358_v52 = vadd.f32 %v1322_v24, %v1250_v33  ;;  %v4654_v33 = vld [vmem:[#allocation27_spill] sm:$0xff]  ;;  %v1627_v24 = vadd.f32 %v1591_v47, %v1503_v54 }
 0x2e9   : > { %v1510_v18 = vadd.f32 %v4636_v28, %v1357_v45  ;;  %v1511_v49 = vadd.f32 %v4649_v1, %v1358_v52  ;;  %v1607_v28 = vpop.permute.xlu0 %1606  ;;  %v1630_v45 = vadd.f32 %v1595_v59, %v1506_v15  ;;  %v1631_v52 = vadd.f32 %v1595_v59, %v1507_v9 }
 0x2ea   : > { %v1326_v57 = vpop.permute.xlu1 %1325 }
 0x2eb   : > { %v1361_v10 = vadd.f32 %v1326_v57, %v1253_v7  ;;  %v1362_v50 = vadd.f32 %v1326_v57, %v1254_v25  ;;  %v1634_v37 = vadd.f32 %v1599_v61, %v1510_v18 }
 0x2ed   : > { %v1514_v53 = vadd.f32 %v4650_v17, %v1361_v10  ;;  %v1515_v11 = vadd.f32 %v4652_v40, %v1362_v50  ;;  %v1711_v25 = vpop.permute.xlu0 %1710  ;;  %v1635_v40 = vadd.f32 %v1599_v61, %v1511_v49 }
 0x2ee   : > { %v1330_v30 = vpop.permute.xlu1 %1329  ;;  %v1746_v51 = vadd.f32 %v1711_v25, %v1622_v13  ;;  %v1747_v36 = vadd.f32 %v1711_v25, %v1623_v63 }
 0x2ef   : > { %v1365_v32 = vadd.f32 %v1330_v30, %v1257_v8  ;;  %v1366_v12 = vadd.f32 %v1330_v30, %v1258_v14  ;;  %v1638_v61 = vadd.f32 %v1603_v4, %v1514_v53  ;;  %v1639_v49 = vadd.f32 %v1603_v4, %v1515_v11 }
 0x2f0   : > { %v1810_v3 = vadd.f32 %v4263_v35, %v1746_v51  ;;  %v1811_v29 = vadd.f32 %v4263_v35, %v1747_v36 }
 0x2f1   : > { %v1518_v56 = vadd.f32 %v4653_v46, %v1365_v32  ;;  %v1519_v23 = vadd.f32 %v4654_v33, %v1366_v12  ;;  %v1715_v62 = vpop.permute.xlu0 %1714 }
 0x2f2   : > { %v4281_v26 = vpop.permute.xlu1 %1797  ;;  %v1834_v1 = vmax.f32 %v1810_v3, 0.0  ;;  %v1835_v57 = vmax.f32 %v1811_v29, 0.0  ;;  %v1750_v58 = vadd.f32 %v1715_v62, %v1626_v42  ;;  %v1751_v0 = vadd.f32 %v1715_v62, %v1627_v24 }
 0x2f3   : > { %v1642_v25 = vadd.f32 %v1607_v28, %v1518_v56  ;;  %v1643_v62 = vadd.f32 %v1607_v28, %v1519_v23 }
 0x2f4   : > { %v1815_v30 = vadd.f32 %v4281_v26, %v1751_v0  ;;  %v1814_v32 = vadd.f32 %v4281_v26, %v1750_v58  ;;  %v4297_v54 = vrot.slane %v1834_v1, 7  ;;  %v4299_v59 = vrot.slane %v1835_v57, 7 }
 0x2f5   : > { %v1719_v14 = vpop.permute.xlu0 %1718 }
 0x2f6   : > { %v4283_v16 = vpop.permute.xlu1 %1801  ;;  %v1754_v27 = vadd.f32 %v1719_v14, %v1630_v45  ;;  %v1755_v50 = vadd.f32 %v1719_v14, %v1631_v52  ;;  %v1839_v51 = vmax.f32 %v1815_v30, 0.0  ;;  %v1838_v36 = vmax.f32 %v1814_v32, 0.0 }
 0x2f8   : > { %v1819_v48 = vadd.f32 %v4281_v26, %v1755_v50  ;;  %v1818_v47 = vadd.f32 %v4281_v26, %v1754_v27  ;;  %v1973_v52 = vrot.slane %v1838_v36, 7 }
 0x2f9   : > { %v1723_v10 = vpop.permute.xlu0 %1722 }
 0x2fa   : > { %v1585_v7 = vpop.permute.xlu1 %1584  ;;  %v1758_v12 = vadd.f32 %v1723_v10, %v1634_v37  ;;  %v1759_v18 = vadd.f32 %v1723_v10, %v1635_v40  ;;  %v1843_v14 = vmax.f32 %v1819_v48, 0.0  ;;  %v1842_v3 = vmax.f32 %v1818_v47, 0.0 }
 0x2fb   : > { %v1620_v15 = vadd.f32 %v1585_v7, %v4190_v19  ;;  %v1621_v9 = vadd.f32 %v1585_v7, %v4194_v43 }
 0x2fc   : > { %v4308_v56 = vadd.f32 %v4283_v16, %v1759_v18  ;;  %v4311_v23 = vadd.f32 %v4283_v16, %v1758_v12  ;;  %v1981_v37 = vrot.slane %v1843_v14, 7  ;;  %v1979_v40 = vrot.slane %v1842_v3, 7 }
 0x2fd   : > { %v1727_v33 = vpop.permute.xlu0 %1726 }
 0x2fe   : > { %v1589_v41 = vpop.permute.xlu1 %1588  ;;  %v1762_v53 = vadd.f32 %v1727_v33, %v1638_v61  ;;  %v1763_v11 = vadd.f32 %v1727_v33, %v1639_v49 }
 0x2ff   : > { %v1624_v29 = vadd.f32 %v1589_v41, %v4202_v55  ;;  %v1625_v19 = vadd.f32 %v1589_v41, %v4205_v2  ;;  %v1976_v41 = vrot.slane %v1839_v51, 7 }
 0x300   : > { %v4318_v0 = vadd.f32 %v4265_v60, %v1762_v53  ;;  %v4321_v27 = vadd.f32 %v4265_v60, %v1763_v11 }
 0x302   : > { %v1593_v44 = vpop.permute.xlu1 %1592 }
 0x303   : > { %v1628_v55 = vadd.f32 %v1593_v44, %v4215_v5  ;;  %v1629_v2 = vadd.f32 %v1593_v44, %v4218_v21  ;;  %v1731_v5 = vpop.permute.xlu0 %1730 }
 0x304   : > { %v1767_v49 = vadd.f32 %v1731_v5, %v1643_v62 }
 0x306   : > { %v4285_v8 = vpop.permute.xlu1 %1596 }
 0x307   : > { %v1632_v48 = vadd.f32 %v4285_v8, %v4231_v20  ;;  %v1766_v20 = vadd.f32 %v1731_v5, %v1642_v25 }
 0x30a   : > { %v4289_v22 = vpop.permute.xlu1 %1600 }
 0x30b   : > { %v1636_v36 = vadd.f32 %v4289_v22, %v4245_v39  ;;  %v1830_v39 = vadd.f32 %v4265_v60, %v1766_v20 }
 0x30e   : > { %v4291_v17 = vpop.permute.xlu1 %1604 }
 0x312   : > { %v1709_v46 = vpop.permute.xlu1 %1708 }
 0x313   : > { %v1744_v13 = vadd.f32 %v1709_v46, %v1620_v15  ;;  %v1745_v63 = vadd.f32 %v1709_v46, %v1621_v9  ;;  %v1846_v46 = vmax.f32 %v4311_v23, 0.0 }
 0x315   : > { %v1808_v43 = vadd.f32 %v4263_v35, %v1744_v13  ;;  %v1809_v7 = vadd.f32 %v4263_v35, %v1745_v63 }
 0x316   : > { %v1713_v4 = vpop.permute.xlu1 %1712 }
 0x317   : > { %v1832_v28 = vmax.f32 %v1808_v43, 0.0  ;;  %v1833_v42 = vmax.f32 %v1809_v7, 0.0  ;;  %v1748_v24 = vadd.f32 %v1713_v4, %v1624_v29  ;;  %v1749_v45 = vadd.f32 %v1713_v4, %v1625_v19 }
 0x319   : > { %v1863_v1 = vrot.slane %v1832_v28, 7  ;;  %v1866_v57 = vrot.slane %v1833_v42, 7  ;;  %v1812_v10 = vadd.f32 %v4263_v35, %v1748_v24  ;;  %v1813_v58 = vadd.f32 %v4263_v35, %v1749_v45 }
 0x31a   : > { %v1717_v50 = vpop.permute.xlu1 %1716  ;;  %v1633_v35 = vadd.f32 %v4285_v8, %v4235_v38  ;;  %v1847_v8 = vmax.f32 %v4308_v56, 0.0 }
 0x31b   : > { %v1836_v30 = vmax.f32 %v1812_v10, 0.0  ;;  %v1837_v21 = vmax.f32 %v1813_v58, 0.0  ;;  %v1752_v44 = vadd.f32 %v1717_v50, %v1628_v55  ;;  %v1753_v32 = vadd.f32 %v1717_v50, %v1629_v2 }
 0x31c   : > { %v1868_v47 = vsel %vm1862_vm6, %v1866_v57, %v4299_v59  ;;  %v1865_v15 = vsel %vm1862_vm6, %v1863_v1, %v4297_v54  ;;  %v2086_v2 = vrot.slane %v1847_v8, 7  ;;  %v1854_v58 = vmax.f32 %v1830_v39, 0.0 }
 0x31d   : > { %v1869_v9 = vrot.slane %v1836_v30, 7  ;;  %v1871_v12 = vrot.slane %v1837_v21, 7  ;;  %v1816_v18 = vadd.f32 %v4281_v26, %v1752_v44  ;;  %v1817_v61 = vadd.f32 %v4281_v26, %v1753_v32  ;;  %1875 = vrot.lane.b32.xlu0 %v1868_v47, %s2909_s26  ;;  %1873 = vrot.lane.b32.xlu1 %v1865_v15, %s2909_s26 }
 0x31e   : > { %v1721_v38 = vpop.permute.xlu1 %1720  ;;  %v1637_v26 = vadd.f32 %v4289_v22, %v4248_v31  ;;  %v1831_v31 = vadd.f32 %v4265_v60, %v1767_v49  ;;  %v1640_v22 = vadd.f32 %v4291_v17, %v4258_v34  ;;  %v2197_v47 = vrot.slane %v1854_v58, 7 }
 0x31f   : > { %v1840_v33 = vmax.f32 %v1816_v18, 0.0  ;;  %v1841_v13 = vmax.f32 %v1817_v61, 0.0  ;;  %v1756_v63 = vadd.f32 %v1721_v38, %v1632_v48  ;;  %v1757_v51 = vadd.f32 %v1721_v38, %v1633_v35 }
 0x320   : > { %v1872_v14 = vsel %vm1862_vm6, %v4299_v59, %v1871_v12  ;;  %v1870_v25 = vsel %vm1862_vm6, %v4297_v54, %v1869_v9  ;;  %v1641_v54 = vadd.f32 %v4291_v17, %v4261_v6  ;;  %v1850_v6 = vmax.f32 %v4318_v0, 0.0 }
 0x321   : > { %v1974_v62 = vrot.slane %v1840_v33, 7  ;;  %v1977_v3 = vrot.slane %v1841_v13, 7  ;;  %v1820_v29 = vadd.f32 %v4283_v16, %v1756_v63  ;;  %v1821_v19 = vadd.f32 %v4283_v16, %v1757_v51  ;;  %1879 = vrot.lane.b32.xlu0 %v1872_v14, %s2909_s26  ;;  %1877 = vrot.lane.b32.xlu1 %v1870_v25, %s2909_s26 }
 0x322   : > { %v1725_v59 = vpop.permute.xlu1 %1724  ;;  %v1851_v17 = vmax.f32 %v4321_v27, 0.0  ;;  %v1855_v50 = vmax.f32 %v1831_v31, 0.0  ;;  %v2191_v48 = vrot.slane %v1850_v6, 7 }
 0x323   : > { %v1844_v43 = vmax.f32 %v1820_v29, 0.0  ;;  %v1845_v7 = vmax.f32 %v1821_v19, 0.0  ;;  %v1760_v53 = vadd.f32 %v1725_v59, %v1636_v36  ;;  %v1761_v11 = vadd.f32 %v1725_v59, %v1637_v26 }
 0x324   : > { %v1978_v4 = vsel %vm1862_vm6, %v1976_v41, %v1977_v3  ;;  %v1975_v56 = vsel %vm1862_vm6, %v1973_v52, %v1974_v62  ;;  %v1982_v23 = vsel %vm1862_vm6, %v1977_v3, %v1981_v37  ;;  %v1980_v28 = vsel %vm1862_vm6, %v1974_v62, %v1979_v40 }
 0x325   : > { %v2082_v42 = vrot.slane %v1844_v43, 7  ;;  %v2085_v24 = vrot.slane %v1845_v7, 7  ;;  %v1824_v34 = vadd.f32 %v4283_v16, %v1760_v53  ;;  %v1825_v45 = vadd.f32 %v4283_v16, %v1761_v11  ;;  %1985 = vrot.lane.b32.xlu0 %v1978_v4, %s2909_s26  ;;  %1983 = vrot.lane.b32.xlu1 %v1975_v56, %s2909_s26 }
 0x326   : > { %v1729_v55 = vpop.permute.xlu1 %1728  ;;  %v2083_v41 = vrot.slane %v1846_v46, 7  ;;  %v2194_v35 = vrot.slane %v1851_v17, 7  ;;  %v2199_v15 = vrot.slane %v1855_v50, 7 }
 0x327   : > { %v1848_v52 = vmax.f32 %v1824_v34, 0.0  ;;  %v1849_v1 = vmax.f32 %v1825_v45, 0.0  ;;  %v1764_v57 = vadd.f32 %v1729_v55, %v1640_v22  ;;  %v1765_v10 = vadd.f32 %v1729_v55, %v1641_v54 }
 0x328   : > { %v2087_v37 = vsel %vm1862_vm6, %v2085_v24, %v2086_v2  ;;  %v2084_v16 = vsel %vm1862_vm6, %v2082_v42, %v2083_v41 }
 0x329   : > { %v2088_v40 = vrot.slane %v1848_v52, 7  ;;  %v2090_v5 = vrot.slane %v1849_v1, 7  ;;  %v1828_v30 = vadd.f32 %v4265_v60, %v1764_v57  ;;  %v1829_v0 = vadd.f32 %v4265_v60, %v1765_v10  ;;  %1989 = vrot.lane.b32.xlu0 %v1982_v23, %s2909_s26  ;;  %1987 = vrot.lane.b32.xlu1 %v1980_v28, %s2909_s26 }
 0x32b   : > { %v1852_v27 = vmax.f32 %v1828_v30, 0.0  ;;  %v1853_v21 = vmax.f32 %v1829_v0, 0.0  ;;  %v2091_v44 = vsel %vm1862_vm6, %v2086_v2, %v2090_v5  ;;  %v2089_v32 = vsel %vm1862_vm6, %v2083_v41, %v2088_v40 }
 0x32d   : > { %v2192_v9 = vrot.slane %v1852_v27, 7  ;;  %v2195_v12 = vrot.slane %v1853_v21, 7  ;;  %2094 = vrot.lane.b32.xlu0 %v2087_v37, %s2909_s26  ;;  %2092 = vrot.lane.b32.xlu1 %v2084_v16, %s2909_s26 }
 0x32f   : > { %v2196_v60 = vsel %vm1862_vm6, %v2194_v35, %v2195_v12  ;;  %v2193_v18 = vsel %vm1862_vm6, %v2191_v48, %v2192_v9  ;;  %v2200_v61 = vsel %vm1862_vm6, %v2195_v12, %v2199_v15  ;;  %v2198_v20 = vsel %vm1862_vm6, %v2192_v9, %v2197_v47 }
 0x331   : > { %2098 = vrot.lane.b32.xlu0 %v2091_v44, %s2909_s26  ;;  %2096 = vrot.lane.b32.xlu1 %v2089_v32, %s2909_s26 }
 0x335   : > { %2203 = vrot.lane.b32.xlu0 %v2196_v60, %s2909_s26  ;;  %2201 = vrot.lane.b32.xlu1 %v2193_v18, %s2909_s26 }
 0x339   : > { %2207 = vrot.lane.b32.xlu0 %v2200_v61, %s2909_s26  ;;  %2205 = vrot.lane.b32.xlu1 %v2198_v20, %s2909_s26 }
 0x33f   : > { %v2546_v49 = vpop.f32.mrb[4].mxu0 }
 0x340   : > { %v1958_v38 = vpop.f32.mrb[5].mxu0 }
 0x343   : > { %v2553_v8 = vpop.f32.mrb[4].mxu1 }
 0x344   : > { %v2067_v46 = vpop.f32.mrb[5].mxu1 }
 0x348   : > { %v2560_v33 = vpop.f32.mrb[6].mxu0 }
 0x349   : > { %v2176_v13 = vpop.f32.mrb[7].mxu0 }
 0x378   : > { %v2567_v63 = vpop.f32.mrb[6].mxu1 }
 0x379   : > { %v2285_v51 = vpop.f32.mrb[7].mxu1 }
 0x38f   : > { %v1874_v36 = vpop.permute.xlu1 %1873  ;;  %v1876_v26 = vpop.permute.xlu0 %1875 }
 0x390   : > { %v1882_v14 = vsel %vm1881_vm7, %v1874_v36, %v1876_v26 }
 0x391   : > { %v1959_v25 = vadd.f32 %v1958_v38, %v1882_v14 }
 0x393   : > { %2294 = vst.msk [vmem:[%s4388_s4] sm:$0xff] %vm259_vm1, %v1959_v25  ;;  %v1878_v62 = vpop.permute.xlu1 %1877  ;;  %v1880_v3 = vpop.permute.xlu0 %1879 }
 0x394   : > { %v1883_v29 = vsel %vm1881_vm7, %v1878_v62, %v1880_v3 }
 0x395   : > { %v1964_v19 = vadd.f32 %v2546_v49, %v1883_v29 }
 0x397   : > { %2295 = vst.msk [vmem:[%s4388_s4 + $0x8] sm:$0xff] %vm259_vm1, %v1964_v19  ;;  %v1984_v39 = vpop.permute.xlu1 %1983  ;;  %v1986_v31 = vpop.permute.xlu0 %1985 }
 0x398   : > { %v1991_v22 = vsel %vm1881_vm7, %v1984_v39, %v1986_v31 }
 0x399   : > { %v2068_v54 = vadd.f32 %v2067_v46, %v1991_v22 }
 0x39b   : > { %2296 = vst.msk [vmem:[%s4388_s4 + $0x10] sm:$0xff] %vm259_vm1, %v2068_v54  ;;  %v1988_v59 = vpop.permute.xlu1 %1987  ;;  %v1990_v43 = vpop.permute.xlu0 %1989 }
 0x39c   : > { %v1992_v7 = vsel %vm1881_vm7, %v1988_v59, %v1990_v43 }
 0x39d   : > { %v2073_v53 = vadd.f32 %v2553_v8, %v1992_v7 }
 0x39f   : > { %2297 = vst.msk [vmem:[%s4388_s4 + $0x18] sm:$0xff] %vm259_vm1, %v2073_v53  ;;  %v2093_v11 = vpop.permute.xlu1 %2092  ;;  %v2095_v4 = vpop.permute.xlu0 %2094 }
 0x3a0   : > { %v2100_v56 = vsel %vm1881_vm7, %v2093_v11, %v2095_v4 }
 0x3a1   : > { %v2177_v23 = vadd.f32 %v2176_v13, %v2100_v56 }
 0x3a3   : > { %2298 = vst.msk [vmem:[%s4388_s4 + $0x20] sm:$0xff] %vm259_vm1, %v2177_v23  ;;  %v2097_v28 = vpop.permute.xlu1 %2096  ;;  %v2099_v42 = vpop.permute.xlu0 %2098 }
 0x3a4   : > { %v2101_v24 = vsel %vm1881_vm7, %v2097_v28, %v2099_v42 }
 0x3a5   : > { %v2182_v34 = vadd.f32 %v2560_v33, %v2101_v24 }
 0x3a7   : > { %2299 = vst.msk [vmem:[%s4388_s4 + $0x28] sm:$0xff] %vm259_vm1, %v2182_v34  ;;  %v2202_v45 = vpop.permute.xlu1 %2201  ;;  %v2204_v6 = vpop.permute.xlu0 %2203 }
 0x3a8   : > { %v2209_v17 = vsel %vm1881_vm7, %v2202_v45, %v2204_v6 }
 0x3a9   : > { %v2286_v55 = vadd.f32 %v2285_v51, %v2209_v17 }
 0x3ab   : > { %2300 = vst.msk [vmem:[%s4388_s4 + $0x30] sm:$0xff] %vm259_vm1, %v2286_v55  ;;  %v2206_v2 = vpop.permute.xlu1 %2205  ;;  %v2208_v41 = vpop.permute.xlu0 %2207 }
 0x3ac   : > { %v2210_v52 = vsel %vm1881_vm7, %v2206_v2, %v2208_v41 }
 0x3ad   : > { %v2291_v1 = vadd.f32 %v2567_v63, %v2210_v52 }
 0x3af   : > { %2301 = vst.msk [vmem:[%s4388_s4 + $0x38] sm:$0xff] %vm259_vm1, %v2291_v1 }
 0x3b0   : > { %2831 = shalt.err (!%p2828_p5)
}
 0x3b1   : > { %s2832_s30 = scalar_lea.hbm %s4416_s13, 1024  ;;  %s2836_s28 = scalar_lea.hbm %s4472_s3, 2048 }
 0x3b2   : > { %p2833_p4 = scmp.ne.s32.totalorder %s4416_s13, %s2832_s30  ;;  %p2837_p12 = scmp.lt.u32.totalorder %s4416_s13, %s4472_s3 }
 0x3b3   : > { %p2838_p1 = scmp.lt.u32.totalorder %s2836_s28, %s2832_s30  ;;  %p2840_p8 = scmp.lt.u32.totalorder %s2832_s30, %s4416_s13 }
 0x3b4   : > { %p2834_p7 = pnand %p2833_p4, %p4656_p9 }
 0x3b5   : > { %p2839_p3 = por %p2838_p1, %p2837_p12 }
 0x3b6   : > { %p2835_p10 = pneg %p2834_p7 }
 0x3b7   : > { %p2841_p11 = por %p2840_p8, %p2839_p3 }
 0x3b9   : > { %p2842_p0 = pnand %p2841_p11, %p2835_p10 }
 0x3bb   : > { %2845 = shalt.err (!%p2842_p0)
}
 0x3bc   : > { %s2911_s5 = smov 128   ;;  %s2912_s7 = smov 8  }
 0x3bd   : > { %2682 = dma.vmem_to_hbm [thread:$0]  (%p4656_p9), %s4418_s29, 1024, %s4416_s13, %s2303_s15, %s2911_s5, %s2911_s5, %s2912_s7  }
 0x3be PF: > { %s2334_s10 = sand.u32 1, %s2880_s12   ;;  %p4657_p6 = scmp.ne.s32.totalorder %s4544_s27, 0 }
 0x3bf   : > { %p4658_p13 = scmp.ge.s32.totalorder %s2900_s17, 2  ;;  %s2335_s8 = scalar_lea.sflag [#allocation5], %s2334_s10 }
 0x3c1   : > { %p2689_p2 = pnand %p4658_p13, %p4657_p6 }
 0x3c3   : > { %2875 = dma.done.wait (!%p2689_p2), %s2335_s8, 1024  }
 0x3c4   : > { %2877 = vsyncadd (!%p2689_p2), %s2335_s8, 4294966272  ;;  %s19_s17 = sadd.s32 1, %s2900_s17   ;;  %s4659_s12 = sld [smem:[#allocation9_spill]] }
 0x3c5   : > { %p16_p5 = scmp.ge.s32.totalorder %s19_s17, 4   ;;  %s4660_s13 = sld [smem:[#allocation10_spill]] }
 0x3c6   : > { %s4661_s14 = sld [smem:[#allocation13_spill]]  ;;  %s4662_s15 = sld [smem:[#allocation11_spill]] }
 0x3c7   : > { %s4663_s16 = sld [smem:[#allocation12_spill]]  ;;  %18 = sbr.rel (!%p16_p5) target bundleno = 9 (0x9), region = 83 }
 0x3ce   :  { %2340 = vsyncpa [#allocation4], 1 }
 0x3cf   :  { %2342 = vsyncpa [#allocation4 + $0x1], 1 }
 0x3d0   :  { %2343 = vsyncpa [#allocation5], 1 }
 0x3d1   :  { %2345 = vsyncpa [#allocation5 + $0x1], 1 }

</bundles_post_ra>
